<compile_context>
chip_gen: v7x
topology: tpu7x:2x2x1
jax: 0.10.0
libtpu: 0.0.40
codegen_flags: <defaults>
</compile_context>

<pallas_src>
import jax
import jax.numpy as jnp
from jax.experimental import pallas as pl
from jax.experimental.pallas import tpu as pltpu

_BN_EPS = 1e-5  # nn.BatchNorm2d default eps


# --------------------------------------------------------------------------- #
# Kernels
# --------------------------------------------------------------------------- #
def _conv_stats_kernel(p_ref, w_ref, y_ref, s_ref, ss_ref):
    """One pixel-tile of the im2col conv: y = patches @ W (MXU, f32 accumulate),
    plus per-tile per-channel sum / sum-of-squares for the BatchNorm statistics."""
    y = jnp.dot(p_ref[...], w_ref[...], preferred_element_type=jnp.float32)
    y_ref[...] = y
    s_ref[...] = jnp.sum(y, axis=0, keepdims=True).reshape(1, 1, -1)
    ss_ref[...] = jnp.sum(y * y, axis=0, keepdims=True).reshape(1, 1, -1)


def _scale_shift_relu_kernel(scale_ref, shift_ref, y_ref, out_ref):
    """Folded BatchNorm + ReLU: out = relu(y * scale + shift)."""
    out_ref[...] = jnp.maximum(y_ref[...] * scale_ref[...] + shift_ref[...], 0.0)


def _scale_shift_res_relu_kernel(scale_ref, shift_ref, y_ref, res_ref, out_ref):
    """Folded BatchNorm + residual add + ReLU."""
    out_ref[...] = jnp.maximum(
        y_ref[...] * scale_ref[...] + shift_ref[...] + res_ref[...], 0.0)


# --------------------------------------------------------------------------- #
# Wrapper helpers
# --------------------------------------------------------------------------- #
def _pick_tile(n, cap):
    """Largest 'nice' row tile (multiple of 8) that divides n, capped at `cap`."""
    for t in (512, 256, 128, 64, 32, 16, 8):
        if t <= cap and t <= n and n % t == 0:
            return t
    return n


def _lane_group(num_pixels, channels):
    """Group g pixels per row so elementwise kernels see a last dim that is a
    multiple of 128 lanes (unmasked vector stores). Falls back to g=1."""
    if channels % 128 == 0:
        return 1
    for g in (2, 4, 8, 16, 32, 64, 128):
        if (channels * g) % 128 == 0 and num_pixels % g == 0:
            return g
    return 1


def _im2col(x_nhwc):
    """(N, H, W, C) -> (N*H*W, 9*C) patches of the 3x3 'same' conv (padding=1).
    Tap order (ky, kx, cin) matches the flattened weight layout used below."""
    n, h, w, c = x_nhwc.shape
    xp = jnp.pad(x_nhwc, ((0, 0), (1, 1), (1, 1), (0, 0)))
    taps = [xp[:, ky:ky + h, kx:kx + w, :] for ky in range(3) for kx in range(3)]
    return jnp.concatenate(taps, axis=-1).reshape(n * h * w, 9 * c)


def _conv_stats(patches, wmat, tile_rows):
    """Tiled im2col conv: y = patches @ wmat plus per-tile BN partial stats."""
    num_pixels, k = patches.shape
    cout = wmat.shape[1]
    n_tiles = num_pixels // tile_rows
    return pl.pallas_call(
        _conv_stats_kernel,
        out_shape=(
            jax.ShapeDtypeStruct((num_pixels, cout), jnp.float32),
            jax.ShapeDtypeStruct((n_tiles, 1, cout), jnp.float32),
            jax.ShapeDtypeStruct((n_tiles, 1, cout), jnp.float32),
        ),
        grid_spec=pltpu.PrefetchScalarGridSpec(
            num_scalar_prefetch=0,
            grid=(n_tiles,),
            in_specs=[
                pl.BlockSpec((tile_rows, k), lambda i: (i, 0)),
                pl.BlockSpec((k, cout), lambda i: (0, 0)),     # weights resident
            ],
            out_specs=[
                pl.BlockSpec((tile_rows, cout), lambda i: (i, 0)),
                pl.BlockSpec((1, 1, cout), lambda i: (i, 0, 0)),
                pl.BlockSpec((1, 1, cout), lambda i: (i, 0, 0)),
            ],
        ),
        compiler_params=pltpu.CompilerParams(
            dimension_semantics=("parallel",)),   # per-tile stats -> no cross-step dep
    )(patches, wmat)


def _bn_fold(sum_tiles, sumsq_tiles, count, gamma, beta):
    """Reduce per-tile stats and fold BatchNorm into one per-channel (scale, shift).
    The conv bias is omitted entirely: BN subtracts the batch mean, so a constant
    per-channel bias cancels exactly."""
    s = jnp.sum(sum_tiles, axis=(0, 1))
    ss = jnp.sum(sumsq_tiles, axis=(0, 1))
    mean = s / count
    var = jnp.maximum(ss / count - mean * mean, 0.0)   # biased var (BN train mode)
    scale = gamma * jax.lax.rsqrt(var + _BN_EPS)
    shift = beta - mean * scale
    return scale, shift


def _bn_act(y, scale, shift, residual=None):
    """Apply relu(y*scale + shift (+residual)) with a lane-dense tiled kernel."""
    num_pixels, c = y.shape
    g = _lane_group(num_pixels, c)
    lanes = c * g
    rows = num_pixels // g
    tile_rows = _pick_tile(rows, cap=512)
    n_tiles = rows // tile_rows

    y_v = y.reshape(rows, lanes)                       # free row-major view
    scale_v = jnp.tile(scale.reshape(1, c), (1, g))
    shift_v = jnp.tile(shift.reshape(1, c), (1, g))

    row_spec = pl.BlockSpec((tile_rows, lanes), lambda i: (i, 0))
    vec_spec = pl.BlockSpec((1, lanes), lambda i: (0, 0))

    if residual is None:
        kernel = _scale_shift_relu_kernel
        in_specs = [vec_spec, vec_spec, row_spec]
        operands = (scale_v, shift_v, y_v)
    else:
        kernel = _scale_shift_res_relu_kernel
        in_specs = [vec_spec, vec_spec, row_spec, row_spec]
        operands = (scale_v, shift_v, y_v, residual.reshape(rows, lanes))

    out = pl.pallas_call(
        kernel,
        out_shape=jax.ShapeDtypeStruct((rows, lanes), jnp.float32),
        grid_spec=pltpu.PrefetchScalarGridSpec(
            num_scalar_prefetch=0,
            grid=(n_tiles,),
            in_specs=in_specs,
            out_specs=row_spec,
        ),
        compiler_params=pltpu.CompilerParams(
            dimension_semantics=("parallel",)),
    )(*operands)
    return out.reshape(num_pixels, c)


def residual_block(x_nchw, params):
    """Forward of ResidualBlock. x: (N, C, H, W) f32; params in PyTorch layouts."""
    w1, b1, g1, be1, w2, b2, g2, be2 = params
    del b1, b2  # conv biases cancel exactly under train-mode BatchNorm (see _bn_fold)
    # TODO(synk): BatchNorm running_mean/running_var buffer updates (training-side
    # module state) are not modeled; only the forward output is produced.

    x = jnp.transpose(x_nchw, (0, 2, 3, 1)).astype(jnp.float32)  # NCHW -> NHWC
    n, h, w, cin = x.shape
    cout = w1.shape[0]
    assert cin == w1.shape[1] and cin == cout, "residual add needs in_ch == out_ch"
    num_pixels = n * h * w
    # 256-row patch blocks (x2 double buffers) stay well inside v7x's 32 MiB scoped VMEM.
    tile_rows = _pick_tile(num_pixels, cap=256)

    # PyTorch (Cout, Cin, 3, 3) -> im2col matrix (9*Cin, Cout); tap order (ky, kx, cin)
    w1m = jnp.transpose(w1, (2, 3, 1, 0)).reshape(9 * cin, cout)
    w2m = jnp.transpose(w2, (2, 3, 1, 0)).reshape(9 * cout, cout)

    # ---- stage 1: conv1 -> bn1 -> relu ----
    y1, s1, ss1 = _conv_stats(_im2col(x), w1m, tile_rows)
    scale1, shift1 = _bn_fold(s1, ss1, num_pixels, g1, be1)
    out1 = _bn_act(y1, scale1, shift1)                         # no residual, no zeros tensor

    # ---- stage 2: conv2 -> bn2 -> +x -> relu ----
    y2, s2, ss2 = _conv_stats(_im2col(out1.reshape(n, h, w, cout)), w2m, tile_rows)
    scale2, shift2 = _bn_fold(s2, ss2, num_pixels, g2, be2)
    out2 = _bn_act(y2, scale2, shift2, residual=x.reshape(num_pixels, cin))

    return jnp.transpose(out2.reshape(n, h, w, cout), (0, 3, 1, 2))  # NHWC -> NCHW


# --------------------------------------------------------------------------- #
# Params + pure-JAX reference + demo
# --------------------------------------------------------------------------- #
def init_params(key, in_channels, out_channels):
    """Deterministic synthetic parameters in PyTorch layouts:
    conv weights (Cout, Cin, 3, 3), conv biases (Cout,), BN gamma/beta (Cout,)."""
    ks = jax.random.split(key, 8)
    w1 = 0.1 * jax.random.normal(ks[0], (out_channels, in_channels, 3, 3), jnp.float32)
    w2 = 0.1 * jax.random.normal(ks[1], (out_channels, out_channels, 3, 3), jnp.float32)
    b1 = 0.05 * jax.random.normal(ks[2], (out_channels,), jnp.float32)
    b2 = 0.05 * jax.random.normal(ks[3], (out_channels,), jnp.float32)
    g1 = 1.0 + 0.1 * jax.random.normal(ks[4], (out_channels,), jnp.float32)
    g2 = 1.0 + 0.1 * jax.random.normal(ks[5], (out_channels,), jnp.float32)
    be1 = 0.1 * jax.random.normal(ks[6], (out_channels,), jnp.float32)
    be2 = 0.1 * jax.random.normal(ks[7], (out_channels,), jnp.float32)
    return (w1, b1, g1, be1, w2, b2, g2, be2)


def _reference(x_nchw, params):
    """Pure-JAX (XLA) reference: conv3x3 -> train-mode BN -> relu, twice, + residual."""
    w1, b1, g1, be1, w2, b2, g2, be2 = params
    x = jnp.transpose(x_nchw, (0, 2, 3, 1)).astype(jnp.float32)

    def conv(inp, w, b):
        wk = jnp.transpose(w, (2, 3, 1, 0))  # HWIO
        y = jax.lax.conv_general_dilated(
            inp, wk, window_strides=(1, 1), padding=((1, 1), (1, 1)),
            dimension_numbers=("NHWC", "HWIO", "NHWC"))
        return y + b.reshape(1, 1, 1, -1)

    def bn(y, gamma, beta):
        mean = jnp.mean(y, axis=(0, 1, 2), keepdims=True)
        var = jnp.mean((y - mean) ** 2, axis=(0, 1, 2), keepdims=True)
        return ((y - mean) * jax.lax.rsqrt(var + _BN_EPS)
                * gamma.reshape(1, 1, 1, -1) + beta.reshape(1, 1, 1, -1))

    out = jnp.maximum(bn(conv(x, w1, b1), g1, be1), 0.0)
    out = jnp.maximum(bn(conv(out, w2, b2), g2, be2) + x, 0.0)
    return jnp.transpose(out, (0, 3, 1, 2))


if __name__ == "__main__":
    key = jax.random.PRNGKey(0)
    kx, kp = jax.random.split(key)
    # nf=64 is the channel width this block is used with in low_light_transformer;
    # it also keeps the channel/lane axis reasonably dense (per the perf review).
    N, C, H, W = 2, 64, 16, 16
    x = jax.random.normal(kx, (N, C, H, W), jnp.float32)
    params = init_params(kp, C, C)

    out = jax.jit(residual_block)(x, params)
    jax.block_until_ready(out)

    assert out.shape == (N, C, H, W)
    assert bool(jnp.all(out >= 0.0))          # final ReLU

    ref = _reference(x, params)
    err = float(jnp.max(jnp.abs(out - ref)))
    # Loose tolerance: both paths use default-precision f32 MXU matmuls (bf16
    # passes) with different accumulation orders.
    assert err < 2e-1, f"mismatch vs reference (max abs err {err})"
    print("KERNEL_OK")
</pallas_src>

<mosaic_0001>
module attributes {stable_mosaic.version = 11 : i64} {
  func.func @_conv_stats_kernel(%arg0: i32, %arg1: memref<256x576xf32, #tpu.memory_space<vmem>>, %arg2: memref<576x64xf32, #tpu.memory_space<vmem>>, %arg3: memref<256x64xf32, #tpu.memory_space<vmem>>, %arg4: memref<1x1x64xf32, #tpu.memory_space<vmem>>, %arg5: memref<1x1x64xf32, #tpu.memory_space<vmem>>) attributes {dimension_semantics = [#tpu.dimension_semantics<parallel>], iteration_bounds = array<i64: 2>, scalar_prefetch = 0 : i64, scratch_operands = 0 : i64, tpu.core_type = #tpu.core_type<tc>, window_params = [{transform_indices = @transform_0, window_bounds = array<i64: 256, 576>}, {pipeline_mode = #tpu.pipeline_mode<synchronous>, transform_indices = @transform_1, window_bounds = array<i64: 576, 64>}, {transform_indices = @transform_2, window_bounds = array<i64: 256, 64>}, {transform_indices = @transform_3, window_bounds = array<i64: 1, 1, 64>}, {transform_indices = @transform_4, window_bounds = array<i64: 1, 1, 64>}]} {
    %c0 = arith.constant 0 : index
    %c0_0 = arith.constant 0 : index
    %0 = vector.load %arg1[%c0, %c0_0] : memref<256x576xf32, #tpu.memory_space<vmem>>, vector<256x576xf32>
    %c0_1 = arith.constant 0 : index
    %c0_2 = arith.constant 0 : index
    %1 = vector.load %arg2[%c0_1, %c0_2] : memref<576x64xf32, #tpu.memory_space<vmem>>, vector<576x64xf32>
    %cst = arith.constant dense<0.000000e+00> : vector<256x64xf32>
    %2 = tpu.matmul %0, %1, %cst {dimension_numbers = #tpu.dot_dimension_numbers<[1], [0], [0], [1], [0, 0, 1, 1], [], []>} : vector<256x576xf32>, vector<576x64xf32>, vector<256x64xf32> -> vector<256x64xf32>
    %c0_3 = arith.constant 0 : index
    %c0_4 = arith.constant 0 : index
    %3 = vector.load %arg3[%c0_3, %c0_4] : memref<256x64xf32, #tpu.memory_space<vmem>>, vector<256x64xf32>
    tpu.vector_store %arg3[%c0_3, %c0_4], %2 {strides = array<i32>} : memref<256x64xf32, #tpu.memory_space<vmem>>, vector<256x64xf32>,
    %cst_5 = arith.constant dense<0.000000e+00> : vector<64xf32>
    %4 = vector.multi_reduction <add>, %2, %cst_5 [0] : vector<256x64xf32> to vector<64xf32>
    %5 = vector.shape_cast %4 : vector<64xf32> to vector<1x64xf32>
    %6 = vector.shape_cast %5 : vector<1x64xf32> to vector<1x1x64xf32>
    %c0_6 = arith.constant 0 : index
    %c0_7 = arith.constant 0 : index
    %c0_8 = arith.constant 0 : index
    %7 = vector.load %arg4[%c0_6, %c0_7, %c0_8] : memref<1x1x64xf32, #tpu.memory_space<vmem>>, vector<1x1x64xf32>
    tpu.vector_store %arg4[%c0_6, %c0_7, %c0_8], %6 {strides = array<i32>} : memref<1x1x64xf32, #tpu.memory_space<vmem>>, vector<1x1x64xf32>,
    %8 = arith.mulf %2, %2 : vector<256x64xf32>
    %cst_9 = arith.constant dense<0.000000e+00> : vector<64xf32>
    %9 = vector.multi_reduction <add>, %8, %cst_9 [0] : vector<256x64xf32> to vector<64xf32>
    %10 = vector.shape_cast %9 : vector<64xf32> to vector<1x64xf32>
    %11 = vector.shape_cast %10 : vector<1x64xf32> to vector<1x1x64xf32>
    %c0_10 = arith.constant 0 : index
    %c0_11 = arith.constant 0 : index
    %c0_12 = arith.constant 0 : index
    %12 = vector.load %arg5[%c0_10, %c0_11, %c0_12] : memref<1x1x64xf32, #tpu.memory_space<vmem>>, vector<1x1x64xf32>
    tpu.vector_store %arg5[%c0_10, %c0_11, %c0_12], %11 {strides = array<i32>} : memref<1x1x64xf32, #tpu.memory_space<vmem>>, vector<1x1x64xf32>,
    return
  }
  func.func @transform_0(%arg0: i32) -> (i32, i32) {
    %c0_i32 = arith.constant 0 : i32
    %c0_i32_0 = arith.constant 0 : i32
    return %arg0, %c0_i32 : i32, i32
  }
  func.func @transform_1(%arg0: i32) -> (i32, i32) {
    %c0_i32 = arith.constant 0 : i32
    %c0_i32_0 = arith.constant 0 : i32
    %c0_i32_1 = arith.constant 0 : i32
    return %c0_i32, %c0_i32_0 : i32, i32
  }
  func.func @transform_2(%arg0: i32) -> (i32, i32) {
    %c0_i32 = arith.constant 0 : i32
    %c0_i32_0 = arith.constant 0 : i32
    return %arg0, %c0_i32 : i32, i32
  }
  func.func @transform_3(%arg0: i32) -> (i32, i32, i32) {
    %c0_i32 = arith.constant 0 : i32
    %c0_i32_0 = arith.constant 0 : i32
    %c0_i32_1 = arith.constant 0 : i32
    return %arg0, %c0_i32, %c0_i32_0 : i32, i32, i32
  }
  func.func @transform_4(%arg0: i32) -> (i32, i32, i32) {
    %c0_i32 = arith.constant 0 : i32
    %c0_i32_0 = arith.constant 0 : i32
    %c0_i32_1 = arith.constant 0 : i32
    return %arg0, %c0_i32, %c0_i32_0 : i32, i32, i32
  }
}

module attributes {stable_mosaic.version = 11 : i64} {
  func.func @_scale_shift_relu_kernel(%arg0: i32, %arg1: memref<1x128xf32, #tpu.memory_space<vmem>>, %arg2: memref<1x128xf32, #tpu.memory_space<vmem>>, %arg3: memref<256x128xf32, #tpu.memory_space<vmem>>, %arg4: memref<256x128xf32, #tpu.memory_space<vmem>>) attributes {dimension_semantics = [#tpu.dimension_semantics<parallel>], iteration_bounds = array<i64: 1>, scalar_prefetch = 0 : i64, scratch_operands = 0 : i64, tpu.core_type = #tpu.core_type<tc>, window_params = [{pipeline_mode = #tpu.pipeline_mode<synchronous>, transform_indices = @transform_0, window_bounds = array<i64: 1, 128>}, {pipeline_mode = #tpu.pipeline_mode<synchronous>, transform_indices = @transform_1, window_bounds = array<i64: 1, 128>}, {transform_indices = @transform_2, window_bounds = array<i64: 256, 128>}, {transform_indices = @transform_3, window_bounds = array<i64: 256, 128>}]} {
    %c0 = arith.constant 0 : index
    %c0_0 = arith.constant 0 : index
    %0 = vector.load %arg3[%c0, %c0_0] : memref<256x128xf32, #tpu.memory_space<vmem>>, vector<256x128xf32>
    %c0_1 = arith.constant 0 : index
    %c0_2 = arith.constant 0 : index
    %1 = vector.load %arg1[%c0_1, %c0_2] : memref<1x128xf32, #tpu.memory_space<vmem>>, vector<1x128xf32>
    %2 = vector.broadcast %1 : vector<1x128xf32> to vector<256x128xf32>
    %3 = arith.mulf %0, %2 : vector<256x128xf32>
    %c0_3 = arith.constant 0 : index
    %c0_4 = arith.constant 0 : index
    %4 = vector.load %arg2[%c0_3, %c0_4] : memref<1x128xf32, #tpu.memory_space<vmem>>, vector<1x128xf32>
    %5 = vector.broadcast %4 : vector<1x128xf32> to vector<256x128xf32>
    %6 = arith.addf %3, %5 : vector<256x128xf32>
    %cst = arith.constant 0.000000e+00 : f32
    %7 = vector.broadcast %cst : f32 to vector<256x128xf32>
    %8 = arith.maximumf %6, %7 : vector<256x128xf32>
    %c0_5 = arith.constant 0 : index
    %c0_6 = arith.constant 0 : index
    %9 = vector.load %arg4[%c0_5, %c0_6] : memref<256x128xf32, #tpu.memory_space<vmem>>, vector<256x128xf32>
    tpu.vector_store %arg4[%c0_5, %c0_6], %8 {strides = array<i32>} : memref<256x128xf32, #tpu.memory_space<vmem>>, vector<256x128xf32>,
    return
  }
  func.func @transform_0(%arg0: i32) -> (i32, i32) {
    %c0_i32 = arith.constant 0 : i32
    %c0_i32_0 = arith.constant 0 : i32
    %c0_i32_1 = arith.constant 0 : i32
    return %c0_i32, %c0_i32_0 : i32, i32
  }
  func.func @transform_1(%arg0: i32) -> (i32, i32) {
    %c0_i32 = arith.constant 0 : i32
    %c0_i32_0 = arith.constant 0 : i32
    %c0_i32_1 = arith.constant 0 : i32
    return %c0_i32, %c0_i32_0 : i32, i32
  }
  func.func @transform_2(%arg0: i32) -> (i32, i32) {
    %c0_i32 = arith.constant 0 : i32
    %c0_i32_0 = arith.constant 0 : i32
    return %arg0, %c0_i32 : i32, i32
  }
  func.func @transform_3(%arg0: i32) -> (i32, i32) {
    %c0_i32 = arith.constant 0 : i32
    %c0_i32_0 = arith.constant 0 : i32
    return %arg0, %c0_i32 : i32, i32
  }
}

module attributes {stable_mosaic.version = 11 : i64} {
  func.func @_scale_shift_res_relu_kernel(%arg0: i32, %arg1: memref<1x128xf32, #tpu.memory_space<vmem>>, %arg2: memref<1x128xf32, #tpu.memory_space<vmem>>, %arg3: memref<256x128xf32, #tpu.memory_space<vmem>>, %arg4: memref<256x128xf32, #tpu.memory_space<vmem>>, %arg5: memref<256x128xf32, #tpu.memory_space<vmem>>) attributes {dimension_semantics = [#tpu.dimension_semantics<parallel>], iteration_bounds = array<i64: 1>, scalar_prefetch = 0 : i64, scratch_operands = 0 : i64, tpu.core_type = #tpu.core_type<tc>, window_params = [{pipeline_mode = #tpu.pipeline_mode<synchronous>, transform_indices = @transform_0, window_bounds = array<i64: 1, 128>}, {pipeline_mode = #tpu.pipeline_mode<synchronous>, transform_indices = @transform_1, window_bounds = array<i64: 1, 128>}, {transform_indices = @transform_2, window_bounds = array<i64: 256, 128>}, {transform_indices = @transform_3, window_bounds = array<i64: 256, 128>}, {transform_indices = @transform_4, window_bounds = array<i64: 256, 128>}]} {
    %c0 = arith.constant 0 : index
    %c0_0 = arith.constant 0 : index
    %0 = vector.load %arg3[%c0, %c0_0] : memref<256x128xf32, #tpu.memory_space<vmem>>, vector<256x128xf32>
    %c0_1 = arith.constant 0 : index
    %c0_2 = arith.constant 0 : index
    %1 = vector.load %arg1[%c0_1, %c0_2] : memref<1x128xf32, #tpu.memory_space<vmem>>, vector<1x128xf32>
    %2 = vector.broadcast %1 : vector<1x128xf32> to vector<256x128xf32>
    %3 = arith.mulf %0, %2 : vector<256x128xf32>
    %c0_3 = arith.constant 0 : index
    %c0_4 = arith.constant 0 : index
    %4 = vector.load %arg2[%c0_3, %c0_4] : memref<1x128xf32, #tpu.memory_space<vmem>>, vector<1x128xf32>
    %5 = vector.broadcast %4 : vector<1x128xf32> to vector<256x128xf32>
    %6 = arith.addf %3, %5 : vector<256x128xf32>
    %c0_5 = arith.constant 0 : index
    %c0_6 = arith.constant 0 : index
    %7 = vector.load %arg4[%c0_5, %c0_6] : memref<256x128xf32, #tpu.memory_space<vmem>>, vector<256x128xf32>
    %8 = arith.addf %6, %7 : vector<256x128xf32>
    %cst = arith.constant 0.000000e+00 : f32
    %9 = vector.broadcast %cst : f32 to vector<256x128xf32>
    %10 = arith.maximumf %8, %9 : vector<256x128xf32>
    %c0_7 = arith.constant 0 : index
    %c0_8 = arith.constant 0 : index
    %11 = vector.load %arg5[%c0_7, %c0_8] : memref<256x128xf32, #tpu.memory_space<vmem>>, vector<256x128xf32>
    tpu.vector_store %arg5[%c0_7, %c0_8], %10 {strides = array<i32>} : memref<256x128xf32, #tpu.memory_space<vmem>>, vector<256x128xf32>,
    return
  }
  func.func @transform_0(%arg0: i32) -> (i32, i32) {
    %c0_i32 = arith.constant 0 : i32
    %c0_i32_0 = arith.constant 0 : i32
    %c0_i32_1 = arith.constant 0 : i32
    return %c0_i32, %c0_i32_0 : i32, i32
  }
  func.func @transform_1(%arg0: i32) -> (i32, i32) {
    %c0_i32 = arith.constant 0 : i32
    %c0_i32_0 = arith.constant 0 : i32
    %c0_i32_1 = arith.constant 0 : i32
    return %c0_i32, %c0_i32_0 : i32, i32
  }
  func.func @transform_2(%arg0: i32) -> (i32, i32) {
    %c0_i32 = arith.constant 0 : i32
    %c0_i32_0 = arith.constant 0 : i32
    return %arg0, %c0_i32 : i32, i32
  }
  func.func @transform_3(%arg0: i32) -> (i32, i32) {
    %c0_i32 = arith.constant 0 : i32
    %c0_i32_0 = arith.constant 0 : i32
    return %arg0, %c0_i32 : i32, i32
  }
  func.func @transform_4(%arg0: i32) -> (i32, i32) {
    %c0_i32 = arith.constant 0 : i32
    %c0_i32_0 = arith.constant 0 : i32
    return %arg0, %c0_i32 : i32, i32
  }
}

</mosaic_0001>

<bundles_post_ra>
// kernel: residual_block.4
= control target key start
LH: loop header
LB: loop body
LE: loop exit
PB: predicated region body
PF: predicated region fallthrough
CT: control target
= control target key end

     0   :  { %s1911_s15 = smov 0   ;;  %s2832_s0 = inlined_call_operand.vmem [shape: f32[512,576], index: 0, kind: input, shape index: {}]   ;;  %s2833_s1 = inlined_call_operand.vmem [shape: f32[576,64], index: 1, kind: input, shape index: {}]   ;;  %s2834_s2 = inlined_call_operand.vmem [shape: f32[512,64], index: 2, kind: output, shape index: {0}]   ;;  %s2835_s3 = inlined_call_operand.vmem [shape: f32[2,1,64], index: 3, kind: output, shape index: {1}]   ;;  %s2836_s4 = inlined_call_operand.vmem [shape: f32[2,1,64], index: 4, kind: output, shape index: {2}]  }
   0x1 LB: > { %s1917_s16 = sadd.s32 4294967295, %s1883_s15   ;;  %p1540_p0 = scmp.ge.s32.totalorder %s1883_s15, 1  ;;  %s1883_s15 = sphi %s1911_s15, %s15_s15  }
   0x2   : > { %p169_p1 = scmp.lt.s32.totalorder %s1883_s15, 3 }
   0x4   : > { %p170_p2 = pnand %p1540_p0, %p169_p1 }
   0x5   : > { %v381_v0 = vld [vmem:[%s2833_s1] sm:$0xff] (!%p170_p2)  ;;  %v382_v1 = vld [vmem:[%s2833_s1 + $0x8] sm:$0xff] (!%p170_p2)  ;;  %v1885_v3 = vmov (!%p170_p2), 0.0|0.0   ;;  %v383_v6 = vld [vmem:[%s2833_s1 + $0x10] sm:$0xff] (!%p170_p2)  ;;  %s1541_s7 = sshll.u32 (!%p170_p2), %s1917_s16, 5  ;;  %vm453_vm0 = vcmask (!%p170_p2), 523264  }
   0x6   : > { %173 = sbr.rel (%p170_p2) target bundleno = 507 (0x1fb), region = 28  ;;  %v413_v2 = vld [vmem:[%s2833_s1 + $0x100] sm:$0xff] (!%p170_p2)  ;;  %1683 = vmatprep.subr.bf16.mxu0 (!%p170_p2), %v1885_v3  ;;  %1795 = vmatprep.subr.bf16.mxu1 (!%p170_p2), %v1885_v3  ;;  %v1684_v4 = vpack.c.bf16 (!%p170_p2), %v382_v1, %v381_v0  ;;  %v414_v5 = vld [vmem:[%s2833_s1 + $0x108] sm:$0xff] (!%p170_p2)  ;;  %v384_v7 = vld [vmem:[%s2833_s1 + $0x18] sm:$0xff] (!%p170_p2)  ;;  %p203_p3 = scmp.lt.s32.totalorder (!%p170_p2), %s1541_s7, 63  ;;  %vm1326_vm1 = vcmask (!%p170_p2), 516096  }
   0x7   : > { %v1941_v8 = vpack.c.bf16 (!%p170_p2), %v414_v5, %v413_v2  ;;  %v415_v9 = vld [vmem:[%s2833_s1 + $0x110] sm:$0xff] (!%p170_p2)  ;;  %v416_v10 = vld [vmem:[%s2833_s1 + $0x118] sm:$0xff] (!%p170_p2)  ;;  %v1687_v11 = vpack.c.bf16 (!%p170_p2), %v384_v7, %v383_v6  ;;  %v385_v13 = vld [vmem:[%s2833_s1 + $0x20] sm:$0xff] (!%p170_p2)  ;;  %p215_p4 = scmp.lt.s32.totalorder (!%p170_p2), %s1917_s16, 1 }
   0x8   : > { %1685 = vmatpush1.bf16.msra.mxu0 (!%p170_p2), %v1684_v4  ;;  %v1952_v12 = vpack.c.bf16 (!%p170_p2), %v416_v10, %v415_v9  ;;  %v386_v14 = vld [vmem:[%s2833_s1 + $0x28] sm:$0xff] (!%p170_p2)  ;;  %v417_v15 = vld [vmem:[%s2833_s1 + $0x120] sm:$0xff] (!%p170_p2)  ;;  %v387_v19 = vld [vmem:[%s2833_s1 + $0x30] sm:$0xff] (!%p170_p2) }
   0x9   : > { %1811 = vmatpush1.bf16.msra.mxu1 (!%p170_p2), %v1941_v8  ;;  %1686 = vmatprep.subr.bf16.mxu0 (!%p170_p2), %v1885_v3  ;;  %v418_v16 = vld [vmem:[%s2833_s1 + $0x128] sm:$0xff] (!%p170_p2)  ;;  %v1690_v17 = vpack.c.bf16 (!%p170_p2), %v386_v14, %v385_v13  ;;  %v388_v20 = vld [vmem:[%s2833_s1 + $0x38] sm:$0xff] (!%p170_p2)  ;;  %v419_v21 = vld [vmem:[%s2833_s1 + $0x130] sm:$0xff] (!%p170_p2) }
   0xa   : > { %1796 = vmatprep.subr.bf16.mxu1 (!%p170_p2), %v1885_v3  ;;  %v1969_v18 = vpack.c.bf16 (!%p170_p2), %v418_v16, %v417_v15  ;;  %v420_v22 = vld [vmem:[%s2833_s1 + $0x138] sm:$0xff] (!%p170_p2)  ;;  %v1693_v23 = vpack.c.bf16 (!%p170_p2), %v388_v20, %v387_v19  ;;  %v389_v25 = vld [vmem:[%s2833_s1 + $0x40] sm:$0xff] (!%p170_p2)  ;;  %v390_v26 = vld [vmem:[%s2833_s1 + $0x48] sm:$0xff] (!%p170_p2) }
   0xb   : > { %v1988_v24 = vpack.c.bf16 (!%p170_p2), %v420_v22, %v419_v21  ;;  %v421_v27 = vld [vmem:[%s2833_s1 + $0x140] sm:$0xff] (!%p170_p2)  ;;  %v422_v28 = vld [vmem:[%s2833_s1 + $0x148] sm:$0xff] (!%p170_p2)  ;;  %v1696_v29 = vpack.c.bf16 (!%p170_p2), %v390_v26, %v389_v25  ;;  %v391_v31 = vld [vmem:[%s2833_s1 + $0x50] sm:$0xff] (!%p170_p2) }
   0xc   : > { %1688 = vmatpush1.bf16.msra.mxu0 (!%p170_p2), %v1687_v11  ;;  %v2006_v30 = vpack.c.bf16 (!%p170_p2), %v422_v28, %v421_v27  ;;  %v392_v32 = vld [vmem:[%s2833_s1 + $0x58] sm:$0xff] (!%p170_p2)  ;;  %v423_v33 = vld [vmem:[%s2833_s1 + $0x150] sm:$0xff] (!%p170_p2)  ;;  %v393_v37 = vld [vmem:[%s2833_s1 + $0x60] sm:$0xff] (!%p170_p2) }
   0xd   : > { %1812 = vmatpush1.bf16.msra.mxu1 %v1952_v12  ;;  %1689 = vmatprep.subr.bf16.mxu0 %v1885_v3  ;;  %s2838_s7 = smov (!%p203_p3, %s1541_s7), 63  ;;  %v424_v34 = vld [vmem:[%s2833_s1 + $0x158] sm:$0xff]  ;;  %v1699_v35 = vpack.c.bf16 %v392_v32, %v391_v31  ;;  %v394_v38 = vld [vmem:[%s2833_s1 + $0x68] sm:$0xff]  ;;  %v425_v39 = vld [vmem:[%s2833_s1 + $0x160] sm:$0xff]  ;;  %s2840_s16 = smov (!%p215_p4, %s1917_s16), 1 }
   0xe   : > { %1797 = vmatprep.subr.bf16.mxu1 %v1885_v3  ;;  %s1867_s9 = smul.u32 40, %s2838_s7  ;;  %v2028_v36 = vpack.c.bf16 %v424_v34, %v423_v33  ;;  %v426_v40 = vld [vmem:[%s2833_s1 + $0x168] sm:$0xff]  ;;  %v1702_v43 = vpack.c.bf16 %v394_v38, %v393_v37  ;;  %v395_v45 = vld [vmem:[%s2833_s1 + $0x70] sm:$0xff]  ;;  %v396_v46 = vld [vmem:[%s2833_s1 + $0x78] sm:$0xff]  ;;  %s217_s10 = scalar_lea.vmem %s2835_s3, %s2840_s16 }
   0xf   : > { %v2047_v44 = vpack.c.bf16 %v426_v40, %v425_v39  ;;  %v427_v47 = vld [vmem:[%s2833_s1 + $0x170] sm:$0xff]  ;;  %v428_v48 = vld [vmem:[%s2833_s1 + $0x178] sm:$0xff]  ;;  %v1705_v49 = vpack.c.bf16 %v396_v46, %v395_v45  ;;  %v397_v51 = vld [vmem:[%s2833_s1 + $0x80] sm:$0xff]  ;;  %s220_s13 = scalar_lea.vmem %s2836_s4, %s2840_s16 }
  0x10   : > { %1691 = vmatpush1.bf16.msra.mxu0 %v1690_v17  ;;  %s2024_s22 = scalar_lea.vmem %s2832_s0, %s1867_s9  ;;  %v2064_v50 = vpack.c.bf16 %v428_v48, %v427_v47  ;;  %v398_v52 = vld [vmem:[%s2833_s1 + $0x88] sm:$0xff]  ;;  %v429_v53 = vld [vmem:[%s2833_s1 + $0x180] sm:$0xff]  ;;  %v399_v57 = vld [vmem:[%s2833_s1 + $0x90] sm:$0xff] }
  0x11   : > { %1813 = vmatpush1.bf16.msra.mxu1 %v1969_v18  ;;  %1692 = vmatprep.subr.bf16.mxu0 %v1885_v3  ;;  %v222_v41 = vld [vmem:[%s2024_s22 + $0x8] sm:$0xff]  ;;  %v264_v42 = vld [vmem:[%s2024_s22 + $0x158] sm:$0xff]  ;;  %v1708_v55 = vpack.c.bf16 %v398_v52, %v397_v51  ;;  %v431_v59 = vld [vmem:[%s2833_s1 + $0x190] sm:$0xff] }
  0x12   : > { %1798 = vmatprep.subr.bf16.mxu1 %v1885_v3  ;;  %614 = vmatprep.mubr.f32.mxu0 %v222_v41  ;;  %v430_v54 = vld [vmem:[%s2833_s1 + $0x188] sm:$0xff]  ;;  %v400_v58 = vld [vmem:[%s2833_s1 + $0x98] sm:$0xff]  ;;  %v401_v63 = vld [vmem:[%s2833_s1 + $0xa0] sm:$0xff] }
  0x13   : > { %879 = vmatprep.mubr.f32.mxu1 %v264_v42  ;;  %v2081_v56 = vpack.c.bf16 %v430_v54, %v429_v53  ;;  %v432_v60 = vld [vmem:[%s2833_s1 + $0x198] sm:$0xff]  ;;  %v1711_v61 = vpack.c.bf16 %v400_v58, %v399_v57  ;;  %v402_v0 = vld [vmem:[%s2833_s1 + $0xa8] sm:$0xff]  ;;  %v433_v1 = vld [vmem:[%s2833_s1 + $0x1a0] sm:$0xff] }
  0x14   : > { %1694 = vmatpush1.bf16.msra.mxu0 %v1693_v23  ;;  %v2098_v62 = vpack.c.bf16 %v432_v60, %v431_v59  ;;  %v434_v2 = vld [vmem:[%s2833_s1 + $0x1a8] sm:$0xff]  ;;  %v1714_v4 = vpack.c.bf16 %v402_v0, %v401_v63  ;;  %v403_v6 = vld [vmem:[%s2833_s1 + $0xb0] sm:$0xff]  ;;  %v404_v7 = vld [vmem:[%s2833_s1 + $0xb8] sm:$0xff] }
  0x15   : > { %1814 = vmatpush1.bf16.msra.mxu1 %v1988_v24  ;;  %1695 = vmatprep.subr.bf16.mxu0 %v1885_v3  ;;  %v2115_v5 = vpack.c.bf16 %v434_v2, %v433_v1  ;;  %v435_v9 = vld [vmem:[%s2833_s1 + $0x1b0] sm:$0xff]  ;;  %v436_v10 = vld [vmem:[%s2833_s1 + $0x1b8] sm:$0xff]  ;;  %v1717_v11 = vpack.c.bf16 %v404_v7, %v403_v6  ;;  %v405_v14 = vld [vmem:[%s2833_s1 + $0xc0] sm:$0xff] }
  0x16   : > { %1799 = vmatprep.subr.bf16.mxu1 %v1885_v3  ;;  %v2132_v13 = vpack.c.bf16 %v436_v10, %v435_v9  ;;  %v406_v15 = vld [vmem:[%s2833_s1 + $0xc8] sm:$0xff]  ;;  %v437_v16 = vld [vmem:[%s2833_s1 + $0x1c0] sm:$0xff]  ;;  %v407_v21 = vld [vmem:[%s2833_s1 + $0xd0] sm:$0xff] }
  0x17   : > { %v438_v17 = vld [vmem:[%s2833_s1 + $0x1c8] sm:$0xff]  ;;  %v1720_v19 = vpack.c.bf16 %v406_v15, %v405_v14  ;;  %v408_v22 = vld [vmem:[%s2833_s1 + $0xd8] sm:$0xff]  ;;  %v439_v23 = vld [vmem:[%s2833_s1 + $0x1d0] sm:$0xff] }
  0x18   : > { %1697 = vmatpush1.bf16.msra.mxu0 %v1696_v29  ;;  %v2149_v20 = vpack.c.bf16 %v438_v17, %v437_v16  ;;  %v440_v25 = vld [vmem:[%s2833_s1 + $0x1d8] sm:$0xff]  ;;  %v1723_v26 = vpack.c.bf16 %v408_v22, %v407_v21  ;;  %v409_v28 = vld [vmem:[%s2833_s1 + $0xe0] sm:$0xff]  ;;  %v410_v29 = vld [vmem:[%s2833_s1 + $0xe8] sm:$0xff] }
  0x19   : > { %1815 = vmatpush1.bf16.msra.mxu1 %v2006_v30  ;;  %1698 = vmatprep.subr.bf16.mxu0 %v1885_v3  ;;  %v2166_v27 = vpack.c.bf16 %v440_v25, %v439_v23  ;;  %v441_v31 = vld [vmem:[%s2833_s1 + $0x1e0] sm:$0xff]  ;;  %v442_v32 = vld [vmem:[%s2833_s1 + $0x1e8] sm:$0xff]  ;;  %v1726_v33 = vpack.c.bf16 %v410_v29, %v409_v28  ;;  %v412_v37 = vld [vmem:[%s2833_s1 + $0xf8] sm:$0xff] }
  0x1a   : > { %1800 = vmatprep.subr.bf16.mxu1 %v1885_v3  ;;  %v2183_v34 = vpack.c.bf16 %v442_v32, %v441_v31  ;;  %v443_v38 = vld [vmem:[%s2833_s1 + $0x1f0] sm:$0xff]  ;;  %v444_v39 = vld [vmem:[%s2833_s1 + $0x1f8] sm:$0xff]  ;;  %v445_v40 = vld [vmem:[%s2833_s1 + $0x200] sm:$0xff] }
  0x1b   : > { %v446_v41 = vld [vmem:[%s2833_s1 + $0x208] sm:$0xff]  ;;  %v221_v46 = vld [vmem:[%s2024_s22] sm:$0xff]  ;;  %v447_v47 = vld [vmem:[%s2833_s1 + $0x210] sm:$0xff] }
  0x1c   : > { %1700 = vmatpush1.bf16.msra.mxu0 %v1699_v35  ;;  %v411_v35 = vld [vmem:[%s2833_s1 + $0xf0] sm:$0xff]  ;;  %v1779_v45 = vpack.c.bf16 %v446_v41, %v445_v40  ;;  %v448_v48 = vld [vmem:[%s2833_s1 + $0x218] sm:$0xff]  ;;  %v269_v52 = vld [vmem:[%s2024_s22 + $0x180] sm:$0xff] }
  0x1d   : > { %1816 = vmatpush1.bf16.msra.mxu1 %v2028_v36  ;;  %1701 = vmatprep.subr.bf16.mxu0 %v1885_v3  ;;  %v1729_v42 = vpack.c.bf16 %v412_v37, %v411_v35  ;;  %v227_v51 = vld [vmem:[%s2024_s22 + $0x30] sm:$0xff]  ;;  %v1783_v53 = vpack.c.bf16 %v448_v48, %v447_v47  ;;  %v226_v54 = vld [vmem:[%s2024_s22 + $0x28] sm:$0xff]  ;;  %v268_v58 = vld [vmem:[%s2024_s22 + $0x178] sm:$0xff] }
  0x1e   : > { %1801 = vmatprep.subr.bf16.mxu1 %v1885_v3  ;;  %v450_v57 = vld [vmem:[%s2833_s1 + $0x228] sm:$0xff]  ;;  %v232_v59 = vld [vmem:[%s2024_s22 + $0x58] sm:$0xff]  ;;  %v451_v63 = vld [vmem:[%s2833_s1 + $0x230] sm:$0xff] }
  0x1f   : > { %v274_v60 = vld [vmem:[%s2024_s22 + $0x1a8] sm:$0xff]  ;;  %v452_v0 = vld [vmem:[%s2833_s1 + $0x238] sm:$0xff]  ;;  %v273_v1 = vld [vmem:[%s2024_s22 + $0x1a0] sm:$0xff] }
  0x20   : > { %1703 = vmatpush1.bf16.msra.mxu0 %v1702_v43  ;;  %v2206_v43 = vpack.c.bf16 %v444_v39, %v443_v38  ;;  %v237_v2 = vld [vmem:[%s2024_s22 + $0x80] sm:$0xff]  ;;  %v1791_v6 = vpack.c.bf16 %v452_v0, %v451_v63  ;;  %v236_v7 = vld [vmem:[%s2024_s22 + $0x78] sm:$0xff]  ;;  %v278_v9 = vld [vmem:[%s2024_s22 + $0x1c8] sm:$0xff] }
  0x21   : > { %1817 = vmatpush1.bf16.msra.mxu1 %v2047_v44  ;;  %1704 = vmatprep.subr.bf16.mxu0 %v1885_v3  ;;  %v242_v10 = vld [vmem:[%s2024_s22 + $0xa8] sm:$0xff]  ;;  %v283_v14 = vld [vmem:[%s2024_s22 + $0x1f0] sm:$0xff]  ;;  %v289_v16 = vld [vmem:[%s2024_s22 + $0x220] sm:$0xff] }
  0x22   : > { %1802 = vmatprep.subr.bf16.mxu1 %v1885_v3  ;;  %v247_v15 = vld [vmem:[%s2024_s22 + $0xd0] sm:$0xff]  ;;  %v288_v17 = vld [vmem:[%s2024_s22 + $0x218] sm:$0xff]  ;;  %v294_v21 = vld [vmem:[%s2024_s22 + $0x248] sm:$0xff] }
  0x23   : > { %v293_v22 = vld [vmem:[%s2024_s22 + $0x240] sm:$0xff]  ;;  %v299_v25 = vld [vmem:[%s2024_s22 + $0x270] sm:$0xff]  ;;  %v262_v28 = vld [vmem:[%s2024_s22 + $0x148] sm:$0xff] }
  0x24   : > { %1706 = vmatpush1.bf16.msra.mxu0 %v1705_v49  ;;  %v263_v49 = vld [vmem:[%s2024_s22 + $0x150] sm:$0xff]  ;;  %v257_v23 = vld [vmem:[%s2024_s22 + $0x120] sm:$0xff]  ;;  %v304_v29 = vld [vmem:[%s2024_s22 + $0x298] sm:$0xff] }
  0x25   : > { %1818 = vmatpush1.bf16.msra.mxu1 %v2064_v50  ;;  %1707 = vmatprep.subr.bf16.mxu0 %v1885_v3  ;;  %v303_v31 = vld [vmem:[%s2024_s22 + $0x290] sm:$0xff]  ;;  %v308_v35 = vld [vmem:[%s2024_s22 + $0x2b8] sm:$0xff]  ;;  %v314_v38 = vld [vmem:[%s2024_s22 + $0x2e8] sm:$0xff] }
  0x26   : > { %1803 = vmatprep.subr.bf16.mxu1 %v1885_v3  ;;  %v267_v32 = vld [vmem:[%s2024_s22 + $0x170] sm:$0xff]  ;;  %v272_v37 = vld [vmem:[%s2024_s22 + $0x198] sm:$0xff]  ;;  %v313_v39 = vld [vmem:[%s2024_s22 + $0x2e0] sm:$0xff] }
  0x27   : > { %v277_v40 = vld [vmem:[%s2024_s22 + $0x1c0] sm:$0xff]  ;;  %v319_v41 = vld [vmem:[%s2024_s22 + $0x310] sm:$0xff]  ;;  %v312_v0 = vld [vmem:[%s2024_s22 + $0x2d8] sm:$0xff] }
  0x28   : > { %1709 = vmatpush1.bf16.msra.mxu0 %v1708_v55  ;;  %v449_v55 = vld [vmem:[%s2833_s1 + $0x220] sm:$0xff]  ;;  %v323_v47 = vld [vmem:[%s2024_s22 + $0x330] sm:$0xff] }
  0x29   : > { %1819 = vmatpush1.bf16.msra.mxu1 %v2081_v56  ;;  %1710 = vmatprep.subr.bf16.mxu0 %v1885_v3  ;;  %v287_v48 = vld [vmem:[%s2024_s22 + $0x210] sm:$0xff]  ;;  %v349_v63 = vld [vmem:[%s2024_s22 + $0x400] sm:$0xff] }
  0x2a   : > { %1804 = vmatprep.subr.bf16.mxu1 %v1885_v3 }
  0x2c   : > { %1712 = vmatpush1.bf16.msra.mxu0 %v1711_v61  ;;  %v231_v61 = vld [vmem:[%s2024_s22 + $0x50] sm:$0xff] }
  0x2d   : > { %1820 = vmatpush1.bf16.msra.mxu1 %v2098_v62  ;;  %1713 = vmatprep.subr.bf16.mxu0 %v1885_v3 }
  0x2e   : > { %1805 = vmatprep.subr.bf16.mxu1 %v1885_v3 }
  0x30   : > { %1715 = vmatpush1.bf16.msra.mxu0 %v1714_v4  ;;  %v279_v4 = vld [vmem:[%s2024_s22 + $0x1d0] sm:$0xff] }
  0x31   : > { %1821 = vmatpush1.bf16.msra.mxu1 %v2115_v5  ;;  %1716 = vmatprep.subr.bf16.mxu0 %v1885_v3 }
  0x32   : > { %1806 = vmatprep.subr.bf16.mxu1 %v1885_v3 }
  0x34   : > { %1718 = vmatpush1.bf16.msra.mxu0 %v1717_v11  ;;  %v241_v11 = vld [vmem:[%s2024_s22 + $0xa0] sm:$0xff] }
  0x35   : > { %1822 = vmatpush1.bf16.msra.mxu1 %v2132_v13  ;;  %1719 = vmatprep.subr.bf16.mxu0 %v1885_v3 }
  0x36   : > { %1807 = vmatprep.subr.bf16.mxu1 %v1885_v3 }
  0x38   : > { %1721 = vmatpush1.bf16.msra.mxu0 %v1720_v19  ;;  %v252_v19 = vld [vmem:[%s2024_s22 + $0xf8] sm:$0xff] }
  0x39   : > { %1823 = vmatpush1.bf16.msra.mxu1 %v2149_v20  ;;  %1722 = vmatprep.subr.bf16.mxu0 %v1885_v3 }
  0x3a   : > { %1808 = vmatprep.subr.bf16.mxu1 %v1885_v3 }
  0x3c   : > { %1724 = vmatpush1.bf16.msra.mxu0 %v1723_v26  ;;  %v298_v26 = vld [vmem:[%s2024_s22 + $0x268] sm:$0xff] }
  0x3d   : > { %1824 = vmatpush1.bf16.msra.mxu1 %v2166_v27  ;;  %1725 = vmatprep.subr.bf16.mxu0 %v1885_v3 }
  0x3e   : > { %1809 = vmatprep.subr.bf16.mxu1 %v1885_v3 }
  0x40   : > { %1727 = vmatpush1.bf16.msra.mxu0 %v1726_v33  ;;  %v309_v33 = vld [vmem:[%s2024_s22 + $0x2c0] sm:$0xff] }
  0x41   : > { %1825 = vmatpush1.bf16.msra.mxu1 %v2183_v34  ;;  %1728 = vmatprep.subr.bf16.mxu0 %v1885_v3 }
  0x42   : > { %1810 = vmatprep.subr.bf16.mxu1 %v1885_v3 }
  0x44   : > { %1730 = vmatpush1.bf16.msra.mxu0 %v1729_v42  ;;  %v318_v42 = vld [vmem:[%s2024_s22 + $0x308] sm:$0xff] }
  0x45   : > { %1826 = vmatpush1.bf16.msra.mxu1 %v2206_v43  ;;  %1731 = vmatprep.subr.bf16.mxu0 %v1885_v3 }
  0x46   : > { %1780 = vmatprep.subr.bf16.mxu1 %v1779_v45 }
  0x47   : > { %615 = vmatmul.mubr.f32.vlgmr.msra.gmra.mrb[0].mxu0 %v221_v46  ;;  %v324_v46 = vld [vmem:[%s2024_s22 + $0x338] sm:$0xff] }
  0x48   : > { %880 = vmatmul.mubr.f32.vlgmr.msra.gmra.mrb[0].mxu1 %v263_v49  ;;  %1733 = vmatpush1.bf16.msra.mxu0 %v1941_v8  ;;  %v1787_v8 = vpack.c.bf16 %v450_v57, %v449_v55  ;;  %v329_v49 = vld [vmem:[%s2024_s22 + $0x360] sm:$0xff]  ;;  %v339_v57 = vld [vmem:[%s2024_s22 + $0x3b0] sm:$0xff] }
  0x49   : > { %619 = vmatprep.mubr.f32.mxu0 %v227_v51  ;;  %884 = vmatprep.mubr.f32.mxu1 %v269_v52  ;;  %v328_v51 = vld [vmem:[%s2024_s22 + $0x358] sm:$0xff]  ;;  %v297_v55 = vld [vmem:[%s2024_s22 + $0x260] sm:$0xff] }
  0x4a   : > { %1734 = vmatprep.subr.bf16.mxu0 %v1885_v3  ;;  %1782 = vmatpush3.bf16.msra.mxu1 %v1779_v45  ;;  %v282_v45 = vld [vmem:[%s2024_s22 + $0x1e8] sm:$0xff]  ;;  %v292_v52 = vld [vmem:[%s2024_s22 + $0x238] sm:$0xff] }
  0x4b   : > { %620 = vmatmul.mubr.f32.gmra.mrb[2].mxu0 %v226_v54  ;;  %1784 = vmatprep.subr.bf16.mxu1 %v1783_v53  ;;  %v333_v54 = vld [vmem:[%s2024_s22 + $0x380] sm:$0xff] }
  0x4c   : > { %885 = vmatmul.mubr.f32.gmra.mrb[2].mxu1 %v268_v58  ;;  %624 = vmatprep.mubr.f32.mxu0 %v232_v59  ;;  %v338_v58 = vld [vmem:[%s2024_s22 + $0x3a8] sm:$0xff] }
  0x4d   : > { %889 = vmatprep.mubr.f32.mxu1 %v274_v60  ;;  %1736 = vmatpush1.bf16.msra.mxu0 %v1952_v12  ;;  %v284_v12 = vld [vmem:[%s2024_s22 + $0x1f8] sm:$0xff]  ;;  %v302_v59 = vld [vmem:[%s2024_s22 + $0x288] sm:$0xff] }
  0x4e   : > { %1737 = vmatprep.subr.bf16.mxu0 %v1885_v3  ;;  %1786 = vmatpush3.bf16.msra.mxu1 %v1783_v53  ;;  %v334_v53 = vld [vmem:[%s2024_s22 + $0x388] sm:$0xff]  ;;  %v344_v60 = vld [vmem:[%s2024_s22 + $0x3d8] sm:$0xff] }
  0x4f   : > { %625 = vmatmul.mubr.f32.gmra.mrb[4].mxu0 %v231_v61  ;;  %1788 = vmatprep.subr.bf16.mxu1 %v1787_v8  ;;  %v307_v61 = vld [vmem:[%s2024_s22 + $0x2b0] sm:$0xff] }
  0x50   : > { %890 = vmatmul.mubr.f32.gmra.mrb[4].mxu1 %v273_v1  ;;  %629 = vmatprep.mubr.f32.mxu0 %v237_v2  ;;  %v354_v1 = vld [vmem:[%s2024_s22 + $0x428] sm:$0xff]  ;;  %v311_v2 = vld [vmem:[%s2024_s22 + $0x2d0] sm:$0xff] }
  0x51   : > { %894 = vmatprep.mubr.f32.mxu1 %v279_v4  ;;  %1739 = vmatpush1.bf16.msra.mxu0 %v1969_v18  ;;  %v246_v18 = vld [vmem:[%s2024_s22 + $0xc8] sm:$0xff]  ;;  %v317_v4 = vld [vmem:[%s2024_s22 + $0x300] sm:$0xff] }
  0x52   : > { %1740 = vmatprep.subr.bf16.mxu0 %v1885_v3  ;;  %1790 = vmatpush3.bf16.msra.mxu1 %v1787_v8  ;;  %v343_v8 = vld [vmem:[%s2024_s22 + $0x3d0] sm:$0xff] }
  0x53   : > { %630 = vmatmul.mubr.f32.gmra.mrb[6].mxu0 %v236_v7  ;;  %1792 = vmatprep.subr.bf16.mxu1 %v1791_v6  ;;  %v316_v7 = vld [vmem:[%s2024_s22 + $0x2f8] sm:$0xff] }
  0x54   : > { %895 = vmatmul.mubr.f32.gmra.mrb[6].mxu1 %v278_v9  ;;  %634 = vmatprep.mubr.f32.mxu0 %v242_v10  ;;  %v358_v9 = vld [vmem:[%s2024_s22 + $0x448] sm:$0xff] }
  0x55   : > { %899 = vmatprep.mubr.f32.mxu1 %v284_v12  ;;  %1742 = vmatpush1.bf16.msra.mxu0 %v1988_v24  ;;  %v251_v24 = vld [vmem:[%s2024_s22 + $0xf0] sm:$0xff]  ;;  %v322_v10 = vld [vmem:[%s2024_s22 + $0x328] sm:$0xff]  ;;  %v364_v12 = vld [vmem:[%s2024_s22 + $0x478] sm:$0xff] }
  0x56   : > { %1743 = vmatprep.subr.bf16.mxu0 %v1885_v3  ;;  %1794 = vmatpush3.bf16.msra.mxu1 %v1791_v6  ;;  %v359_v6 = vld [vmem:[%s2024_s22 + $0x450] sm:$0xff] }
  0x57   : > { %635 = vmatmul.mubr.f32.gmra.mrb[8].mxu0 %v241_v11  ;;  %v321_v11 = vld [vmem:[%s2024_s22 + $0x320] sm:$0xff] }
  0x58   : > { %900 = vmatmul.mubr.f32.gmra.mrb[8].mxu1 %v283_v14  ;;  %639 = vmatprep.mubr.f32.mxu0 %v247_v15  ;;  %v363_v14 = vld [vmem:[%s2024_s22 + $0x470] sm:$0xff] }
  0x59   : > { %904 = vmatprep.mubr.f32.mxu1 %v289_v16  ;;  %1745 = vmatpush1.bf16.msra.mxu0 %v2006_v30  ;;  %v256_v30 = vld [vmem:[%s2024_s22 + $0x118] sm:$0xff]  ;;  %v327_v15 = vld [vmem:[%s2024_s22 + $0x350] sm:$0xff]  ;;  %v369_v16 = vld [vmem:[%s2024_s22 + $0x4a0] sm:$0xff] }
  0x5a   : > { %1746 = vmatprep.subr.bf16.mxu0 %v1885_v3 }
  0x5b   : > { %640 = vmatmul.mubr.f32.gmra.mrb[10].mxu0 %v246_v18  ;;  %v326_v18 = vld [vmem:[%s2024_s22 + $0x348] sm:$0xff] }
  0x5c   : > { %905 = vmatmul.mubr.f32.gmra.mrb[10].mxu1 %v288_v17  ;;  %644 = vmatprep.mubr.f32.mxu0 %v252_v19  ;;  %v368_v17 = vld [vmem:[%s2024_s22 + $0x498] sm:$0xff] }
  0x5d   : > { %909 = vmatprep.mubr.f32.mxu1 %v294_v21  ;;  %1748 = vmatpush1.bf16.msra.mxu0 %v2028_v36  ;;  %v261_v36 = vld [vmem:[%s2024_s22 + $0x140] sm:$0xff]  ;;  %v332_v19 = vld [vmem:[%s2024_s22 + $0x378] sm:$0xff]  ;;  %v374_v21 = vld [vmem:[%s2024_s22 + $0x4c8] sm:$0xff] }
  0x5e   : > { %1749 = vmatprep.subr.bf16.mxu0 %v1885_v3 }
  0x5f   : > { %645 = vmatmul.mubr.f32.gmra.mrb[12].mxu0 %v251_v24  ;;  %v331_v24 = vld [vmem:[%s2024_s22 + $0x370] sm:$0xff] }
  0x60   : > { %910 = vmatmul.mubr.f32.gmra.mrb[12].mxu1 %v293_v22  ;;  %649 = vmatprep.mubr.f32.mxu0 %v257_v23  ;;  %v373_v22 = vld [vmem:[%s2024_s22 + $0x4c0] sm:$0xff] }
  0x61   : > { %914 = vmatprep.mubr.f32.mxu1 %v299_v25  ;;  %1751 = vmatpush1.bf16.msra.mxu0 %v2047_v44  ;;  %v266_v44 = vld [vmem:[%s2024_s22 + $0x168] sm:$0xff]  ;;  %v337_v23 = vld [vmem:[%s2024_s22 + $0x3a0] sm:$0xff]  ;;  %v379_v25 = vld [vmem:[%s2024_s22 + $0x4f0] sm:$0xff] }
  0x62   : > { %1752 = vmatprep.subr.bf16.mxu0 %v1885_v3 }
  0x63   : > { %650 = vmatmul.mubr.f32.gmra.mrb[14].mxu0 %v256_v30  ;;  %v336_v30 = vld [vmem:[%s2024_s22 + $0x398] sm:$0xff] }
  0x64   : > { %915 = vmatmul.mubr.f32.gmra.mrb[14].mxu1 %v298_v26  ;;  %654 = vmatprep.mubr.f32.mxu0 %v262_v28  ;;  %v378_v26 = vld [vmem:[%s2024_s22 + $0x4e8] sm:$0xff] }
  0x65   : > { %919 = vmatprep.mubr.f32.mxu1 %v304_v29  ;;  %1754 = vmatpush1.bf16.msra.mxu0 %v2064_v50  ;;  %v271_v50 = vld [vmem:[%s2024_s22 + $0x190] sm:$0xff]  ;;  %v342_v28 = vld [vmem:[%s2024_s22 + $0x3c8] sm:$0xff]  ;;  %v225_v29 = vld [vmem:[%s2024_s22 + $0x20] sm:$0xff] }
  0x66   : > { %1755 = vmatprep.subr.bf16.mxu0 %v1885_v3 }
  0x67   : > { %655 = vmatmul.mubr.f32.gmra.mrb[16].mxu0 %v261_v36  ;;  %v341_v36 = vld [vmem:[%s2024_s22 + $0x3c0] sm:$0xff] }
  0x68   : > { %920 = vmatmul.mubr.f32.gmra.mrb[16].mxu1 %v303_v31  ;;  %659 = vmatprep.mubr.f32.mxu0 %v267_v32  ;;  %v230_v31 = vld [vmem:[%s2024_s22 + $0x48] sm:$0xff]  ;;  %v347_v32 = vld [vmem:[%s2024_s22 + $0x3f0] sm:$0xff] }
  0x69   : > { %924 = vmatprep.mubr.f32.mxu1 %v309_v33  ;;  %1757 = vmatpush1.bf16.msra.mxu0 %v2081_v56  ;;  %v276_v56 = vld [vmem:[%s2024_s22 + $0x1b8] sm:$0xff]  ;;  %v235_v33 = vld [vmem:[%s2024_s22 + $0x70] sm:$0xff] }
  0x6a   : > { %1758 = vmatprep.subr.bf16.mxu0 %v1885_v3 }
  0x6b   : > { %660 = vmatmul.mubr.f32.gmra.mrb[18].mxu0 %v266_v44  ;;  %v346_v44 = vld [vmem:[%s2024_s22 + $0x3e8] sm:$0xff] }
  0x6c   : > { %925 = vmatmul.mubr.f32.gmra.mrb[18].mxu1 %v308_v35  ;;  %664 = vmatprep.mubr.f32.mxu0 %v272_v37  ;;  %v240_v35 = vld [vmem:[%s2024_s22 + $0x98] sm:$0xff] }
  0x6d   : > { %929 = vmatprep.mubr.f32.mxu1 %v314_v38  ;;  %1760 = vmatpush1.bf16.msra.mxu0 %v2098_v62  ;;  %v281_v62 = vld [vmem:[%s2024_s22 + $0x1e0] sm:$0xff]  ;;  %v352_v37 = vld [vmem:[%s2024_s22 + $0x418] sm:$0xff] }
  0x6e   : > { %1761 = vmatprep.subr.bf16.mxu0 %v1885_v3  ;;  %v245_v38 = vld [vmem:[%s2024_s22 + $0xc0] sm:$0xff] }
  0x6f   : > { %665 = vmatmul.mubr.f32.gmra.mrb[20].mxu0 %v271_v50  ;;  %v351_v50 = vld [vmem:[%s2024_s22 + $0x410] sm:$0xff] }
  0x70   : > { %930 = vmatmul.mubr.f32.gmra.mrb[20].mxu1 %v313_v39  ;;  %669 = vmatprep.mubr.f32.mxu0 %v277_v40  ;;  %v250_v39 = vld [vmem:[%s2024_s22 + $0xe8] sm:$0xff]  ;;  %v357_v40 = vld [vmem:[%s2024_s22 + $0x440] sm:$0xff] }
  0x71   : > { %934 = vmatprep.mubr.f32.mxu1 %v319_v41  ;;  %1763 = vmatpush1.bf16.msra.mxu0 %v2115_v5  ;;  %v286_v5 = vld [vmem:[%s2024_s22 + $0x208] sm:$0xff]  ;;  %v255_v41 = vld [vmem:[%s2024_s22 + $0x110] sm:$0xff] }
  0x72   : > { %1764 = vmatprep.subr.bf16.mxu0 %v1885_v3 }
  0x73   : > { %670 = vmatmul.mubr.f32.gmra.mrb[22].mxu0 %v276_v56  ;;  %v356_v56 = vld [vmem:[%s2024_s22 + $0x438] sm:$0xff] }
  0x74   : > { %935 = vmatmul.mubr.f32.gmra.mrb[22].mxu1 %v318_v42  ;;  %674 = vmatprep.mubr.f32.mxu0 %v282_v45  ;;  %v260_v42 = vld [vmem:[%s2024_s22 + $0x138] sm:$0xff]  ;;  %v362_v45 = vld [vmem:[%s2024_s22 + $0x468] sm:$0xff] }
  0x75   : > { %939 = vmatprep.mubr.f32.mxu1 %v324_v46  ;;  %1766 = vmatpush1.bf16.msra.mxu0 %v2132_v13  ;;  %v291_v13 = vld [vmem:[%s2024_s22 + $0x230] sm:$0xff]  ;;  %v265_v46 = vld [vmem:[%s2024_s22 + $0x160] sm:$0xff] }
  0x76   : > { %1767 = vmatprep.subr.bf16.mxu0 %v1885_v3 }
  0x77   : > { %675 = vmatmul.mubr.f32.gmra.mrb[24].mxu0 %v281_v62  ;;  %v361_v62 = vld [vmem:[%s2024_s22 + $0x460] sm:$0xff] }
  0x78   : > { %940 = vmatmul.mubr.f32.gmra.mrb[24].mxu1 %v323_v47  ;;  %679 = vmatprep.mubr.f32.mxu0 %v287_v48  ;;  %v270_v47 = vld [vmem:[%s2024_s22 + $0x188] sm:$0xff]  ;;  %v367_v48 = vld [vmem:[%s2024_s22 + $0x490] sm:$0xff] }
  0x79   : > { %944 = vmatprep.mubr.f32.mxu1 %v329_v49  ;;  %1769 = vmatpush1.bf16.msra.mxu0 %v2149_v20  ;;  %v296_v20 = vld [vmem:[%s2024_s22 + $0x258] sm:$0xff]  ;;  %v275_v49 = vld [vmem:[%s2024_s22 + $0x1b0] sm:$0xff] }
  0x7a   : > { %1770 = vmatprep.subr.bf16.mxu0 %v1885_v3 }
  0x7b   : > { %680 = vmatmul.mubr.f32.gmra.mrb[26].mxu0 %v286_v5  ;;  %v366_v5 = vld [vmem:[%s2024_s22 + $0x488] sm:$0xff] }
  0x7c   : > { %945 = vmatmul.mubr.f32.gmra.mrb[26].mxu1 %v328_v51  ;;  %684 = vmatprep.mubr.f32.mxu0 %v292_v52  ;;  %v280_v51 = vld [vmem:[%s2024_s22 + $0x1d8] sm:$0xff] }
  0x7d   : > { %949 = vmatprep.mubr.f32.mxu1 %v334_v53  ;;  %1772 = vmatpush1.bf16.msra.mxu0 %v2166_v27  ;;  %v301_v27 = vld [vmem:[%s2024_s22 + $0x280] sm:$0xff]  ;;  %v372_v52 = vld [vmem:[%s2024_s22 + $0x4b8] sm:$0xff] }
  0x7e   : > { %1773 = vmatprep.subr.bf16.mxu0 %v1885_v3  ;;  %v285_v53 = vld [vmem:[%s2024_s22 + $0x200] sm:$0xff] }
  0x7f   : > { %685 = vmatmul.mubr.f32.gmra.mrb[28].mxu0 %v291_v13  ;;  %v371_v13 = vld [vmem:[%s2024_s22 + $0x4b0] sm:$0xff] }
  0x80   : > { %950 = vmatmul.mubr.f32.gmra.mrb[28].mxu1 %v333_v54  ;;  %689 = vmatprep.mubr.f32.mxu0 %v297_v55  ;;  %v290_v54 = vld [vmem:[%s2024_s22 + $0x228] sm:$0xff]  ;;  %v377_v55 = vld [vmem:[%s2024_s22 + $0x4e0] sm:$0xff] }
  0x81   : > { %954 = vmatprep.mubr.f32.mxu1 %v339_v57  ;;  %1775 = vmatpush1.bf16.msra.mxu0 %v2183_v34  ;;  %v348_v34 = vld [vmem:[%s2024_s22 + $0x3f8] sm:$0xff]  ;;  %v295_v57 = vld [vmem:[%s2024_s22 + $0x250] sm:$0xff] }
  0x82   : > { %1776 = vmatprep.subr.bf16.mxu0 %v1885_v3  ;;  %v306_v3 = vld [vmem:[%s2024_s22 + $0x2a8] sm:$0xff] }
  0x83   : > { %690 = vmatmul.mubr.f32.gmra.mrb[30].mxu0 %v296_v20  ;;  %v376_v20 = vld [vmem:[%s2024_s22 + $0x4d8] sm:$0xff] }
  0x84   : > { %955 = vmatmul.mubr.f32.gmra.mrb[30].mxu1 %v338_v58  ;;  %694 = vmatprep.mubr.f32.mxu0 %v302_v59  ;;  %v300_v58 = vld [vmem:[%s2024_s22 + $0x278] sm:$0xff] }
  0x85   : > { %959 = vmatprep.mubr.f32.mxu1 %v344_v60  ;;  %1778 = vmatpush1.bf16.msra.mxu0 %v2206_v43  ;;  %v353_v43 = vld [vmem:[%s2024_s22 + $0x420] sm:$0xff]  ;;  %v224_v59 = vld [vmem:[%s2024_s22 + $0x18] sm:$0xff] }
  0x86   : > { %v305_v60 = vld [vmem:[%s2024_s22 + $0x2a0] sm:$0xff] }
  0x87   : > { %695 = vmatmul.mubr.f32.gmra.mrb[32].mxu0 %v301_v27  ;;  %v223_v27 = vld [vmem:[%s2024_s22 + $0x10] sm:$0xff] }
  0x88   : > { %960 = vmatmul.mubr.f32.gmra.mrb[32].mxu1 %v343_v8  ;;  %699 = vmatprep.mubr.f32.mxu0 %v307_v61  ;;  %v310_v8 = vld [vmem:[%s2024_s22 + $0x2c8] sm:$0xff]  ;;  %v229_v61 = vld [vmem:[%s2024_s22 + $0x40] sm:$0xff] }
  0x89   : > { %964 = vmatprep.mubr.f32.mxu1 %v349_v63  ;;  %v315_v63 = vld [vmem:[%s2024_s22 + $0x2f0] sm:$0xff] }
  0x8b   : > { %700 = vmatmul.mubr.f32.gmra.mrb[34].mxu0 %v306_v3  ;;  %v228_v3 = vld [vmem:[%s2024_s22 + $0x38] sm:$0xff] }
  0x8c   : > { %965 = vmatmul.mubr.f32.gmra.mrb[34].mxu1 %v348_v34  ;;  %704 = vmatprep.mubr.f32.mxu0 %v312_v0  ;;  %v320_v34 = vld [vmem:[%s2024_s22 + $0x318] sm:$0xff]  ;;  %v234_v0 = vld [vmem:[%s2024_s22 + $0x68] sm:$0xff] }
  0x8d   : > { %969 = vmatprep.mubr.f32.mxu1 %v354_v1  ;;  %v325_v1 = vld [vmem:[%s2024_s22 + $0x340] sm:$0xff] }
  0x8f   : > { %705 = vmatmul.mubr.f32.gmra.mrb[36].mxu0 %v311_v2  ;;  %v233_v2 = vld [vmem:[%s2024_s22 + $0x60] sm:$0xff] }
  0x90   : > { %970 = vmatmul.mubr.f32.gmra.mrb[36].mxu1 %v353_v43  ;;  %709 = vmatprep.mubr.f32.mxu0 %v317_v4  ;;  %v330_v43 = vld [vmem:[%s2024_s22 + $0x368] sm:$0xff]  ;;  %v239_v4 = vld [vmem:[%s2024_s22 + $0x90] sm:$0xff] }
  0x91   : > { %974 = vmatprep.mubr.f32.mxu1 %v359_v6  ;;  %v335_v6 = vld [vmem:[%s2024_s22 + $0x390] sm:$0xff] }
  0x93   : > { %710 = vmatmul.mubr.f32.gmra.mrb[38].mxu0 %v316_v7  ;;  %v238_v7 = vld [vmem:[%s2024_s22 + $0x88] sm:$0xff] }
  0x94   : > { %975 = vmatmul.mubr.f32.gmra.mrb[38].mxu1 %v358_v9  ;;  %714 = vmatprep.mubr.f32.mxu0 %v322_v10  ;;  %v340_v9 = vld [vmem:[%s2024_s22 + $0x3b8] sm:$0xff] }
  0x95   : > { %979 = vmatprep.mubr.f32.mxu1 %v364_v12  ;;  %v244_v10 = vld [vmem:[%s2024_s22 + $0xb8] sm:$0xff]  ;;  %v345_v12 = vld [vmem:[%s2024_s22 + $0x3e0] sm:$0xff] }
  0x97   : > { %715 = vmatmul.mubr.f32.gmra.mrb[40].mxu0 %v321_v11  ;;  %v243_v11 = vld [vmem:[%s2024_s22 + $0xb0] sm:$0xff] }
  0x98   : > { %980 = vmatmul.mubr.f32.gmra.mrb[40].mxu1 %v363_v14  ;;  %719 = vmatprep.mubr.f32.mxu0 %v327_v15  ;;  %v350_v14 = vld [vmem:[%s2024_s22 + $0x408] sm:$0xff]  ;;  %v249_v15 = vld [vmem:[%s2024_s22 + $0xe0] sm:$0xff] }
  0x99   : > { %984 = vmatprep.mubr.f32.mxu1 %v369_v16  ;;  %v355_v16 = vld [vmem:[%s2024_s22 + $0x430] sm:$0xff] }
  0x9b   : > { %720 = vmatmul.mubr.f32.gmra.mrb[42].mxu0 %v326_v18  ;;  %v248_v18 = vld [vmem:[%s2024_s22 + $0xd8] sm:$0xff] }
  0x9c   : > { %985 = vmatmul.mubr.f32.gmra.mrb[42].mxu1 %v368_v17  ;;  %724 = vmatprep.mubr.f32.mxu0 %v332_v19  ;;  %v360_v17 = vld [vmem:[%s2024_s22 + $0x458] sm:$0xff]  ;;  %v254_v19 = vld [vmem:[%s2024_s22 + $0x108] sm:$0xff] }
  0x9d   : > { %989 = vmatprep.mubr.f32.mxu1 %v374_v21  ;;  %v365_v21 = vld [vmem:[%s2024_s22 + $0x480] sm:$0xff] }
  0x9f   : > { %725 = vmatmul.mubr.f32.gmra.mrb[44].mxu0 %v331_v24  ;;  %v253_v24 = vld [vmem:[%s2024_s22 + $0x100] sm:$0xff] }
  0xa0   : > { %990 = vmatmul.mubr.f32.gmra.mrb[44].mxu1 %v373_v22  ;;  %729 = vmatprep.mubr.f32.mxu0 %v337_v23  ;;  %v370_v22 = vld [vmem:[%s2024_s22 + $0x4a8] sm:$0xff]  ;;  %v259_v23 = vld [vmem:[%s2024_s22 + $0x130] sm:$0xff] }
  0xa1   : > { %994 = vmatprep.mubr.f32.mxu1 %v379_v25  ;;  %v375_v25 = vld [vmem:[%s2024_s22 + $0x4d0] sm:$0xff] }
  0xa3   : > { %730 = vmatmul.mubr.f32.gmra.mrb[46].mxu0 %v336_v30  ;;  %v258_v30 = vld [vmem:[%s2024_s22 + $0x128] sm:$0xff] }
  0xa4   : > { %995 = vmatmul.mubr.f32.gmra.mrb[46].mxu1 %v378_v26  ;;  %734 = vmatprep.mubr.f32.mxu0 %v342_v28  ;;  %v380_v26 = vld [vmem:[%s2024_s22 + $0x4f8] sm:$0xff]  ;;  %s1544_s22 = sshll.u32 %s2838_s7, 3 }
  0xa5   : > { %1635 = vmatprep.mubr.msk.f32.mxu1 %vm453_vm0, %v225_v29  ;;  %s2510_s8 = scalar_lea.vmem %s2834_s2, %s1544_s22 }
  0xa7   : > { %735 = vmatmul.mubr.f32.gmra.mrb[48].mxu0 %v341_v36 }
  0xa8   : > { %1636 = vmatmul.mubr.msk.f32.vlgmr.msra.gmra.mrb[48].mxu1 %vm453_vm0, %v230_v31  ;;  %739 = vmatprep.mubr.f32.mxu0 %v347_v32 }
  0xa9   : > { %1638 = vmatprep.mubr.msk.f32.mxu1 %vm453_vm0, %v235_v33 }
  0xab   : > { %740 = vmatmul.mubr.f32.gmra.mrb[50].mxu0 %v346_v44 }
  0xac   : > { %1639 = vmatmul.mubr.msk.f32.gmra.mrb[50].mxu1 %vm453_vm0, %v240_v35  ;;  %744 = vmatprep.mubr.f32.mxu0 %v352_v37 }
  0xad   : > { %1641 = vmatprep.mubr.msk.f32.mxu1 %vm453_vm0, %v245_v38 }
  0xaf   : > { %745 = vmatmul.mubr.f32.gmra.mrb[52].mxu0 %v351_v50 }
  0xb0   : > { %1642 = vmatmul.mubr.msk.f32.gmra.mrb[52].mxu1 %vm453_vm0, %v250_v39  ;;  %749 = vmatprep.mubr.f32.mxu0 %v357_v40 }
  0xb1   : > { %1644 = vmatprep.mubr.msk.f32.mxu1 %vm453_vm0, %v255_v41 }
  0xb3   : > { %750 = vmatmul.mubr.f32.gmra.mrb[54].mxu0 %v356_v56 }
  0xb4   : > { %1645 = vmatmul.mubr.msk.f32.gmra.mrb[54].mxu1 %vm453_vm0, %v260_v42  ;;  %754 = vmatprep.mubr.f32.mxu0 %v362_v45 }
  0xb5   : > { %1647 = vmatprep.mubr.msk.f32.mxu1 %vm453_vm0, %v265_v46 }
  0xb7   : > { %755 = vmatmul.mubr.f32.gmra.mrb[56].mxu0 %v361_v62 }
  0xb8   : > { %1648 = vmatmul.mubr.msk.f32.gmra.mrb[56].mxu1 %vm453_vm0, %v270_v47  ;;  %759 = vmatprep.mubr.f32.mxu0 %v367_v48 }
  0xb9   : > { %1650 = vmatprep.mubr.msk.f32.mxu1 %vm453_vm0, %v275_v49 }
  0xbb   : > { %760 = vmatmul.mubr.f32.gmra.mrb[58].mxu0 %v366_v5 }
  0xbc   : > { %1651 = vmatmul.mubr.msk.f32.gmra.mrb[58].mxu1 %vm453_vm0, %v280_v51  ;;  %764 = vmatprep.mubr.f32.mxu0 %v372_v52 }
  0xbd   : > { %1653 = vmatprep.mubr.msk.f32.mxu1 %vm453_vm0, %v285_v53 }
  0xbf   : > { %765 = vmatmul.mubr.f32.gmra.mrb[60].mxu0 %v371_v13 }
  0xc0   : > { %1654 = vmatmul.mubr.msk.f32.gmra.mrb[60].mxu1 %vm453_vm0, %v290_v54  ;;  %769 = vmatprep.mubr.f32.mxu0 %v377_v55 }
  0xc1   : > { %1656 = vmatprep.mubr.msk.f32.mxu1 %vm453_vm0, %v295_v57 }
  0xc3   : > { %770 = vmatmul.mubr.f32.gmra.mrb[62].mxu0 %v376_v20 }
  0xc4   : > { %1657 = vmatmul.mubr.msk.f32.gmra.mrb[62].mxu1 %vm453_vm0, %v300_v58  ;;  %839 = vmatprep.mubr.f32.mxu0 %v224_v59 }
  0xc5   : > { %1659 = vmatprep.mubr.msk.f32.mxu1 %vm453_vm0, %v305_v60 }
  0xc7   : > { %840 = vmatmul.mubr.f32.vlgmr.msra.gmra.mrb[0].mxu0 %v223_v27 }
  0xc8   : > { %1660 = vmatmul.mubr.msk.f32.gmra.mrb[64].mxu1 %vm453_vm0, %v310_v8  ;;  %844 = vmatprep.mubr.f32.mxu0 %v229_v61 }
  0xc9   : > { %1662 = vmatprep.mubr.msk.f32.mxu1 %vm453_vm0, %v315_v63 }
  0xcb   : > { %845 = vmatmul.mubr.f32.gmra.mrb[2].mxu0 %v228_v3 }
  0xcc   : > { %1663 = vmatmul.mubr.msk.f32.gmra.mrb[66].mxu1 %vm453_vm0, %v320_v34  ;;  %849 = vmatprep.mubr.f32.mxu0 %v234_v0 }
  0xcd   : > { %1665 = vmatprep.mubr.msk.f32.mxu1 %vm453_vm0, %v325_v1 }
  0xcf   : > { %850 = vmatmul.mubr.f32.gmra.mrb[4].mxu0 %v233_v2 }
  0xd0   : > { %1666 = vmatmul.mubr.msk.f32.gmra.mrb[68].mxu1 %vm453_vm0, %v330_v43  ;;  %854 = vmatprep.mubr.f32.mxu0 %v239_v4 }
  0xd1   : > { %1668 = vmatprep.mubr.msk.f32.mxu1 %vm453_vm0, %v335_v6 }
  0xd3   : > { %855 = vmatmul.mubr.f32.gmra.mrb[6].mxu0 %v238_v7 }
  0xd4   : > { %1669 = vmatmul.mubr.msk.f32.gmra.mrb[70].mxu1 %vm453_vm0, %v340_v9  ;;  %859 = vmatprep.mubr.f32.mxu0 %v244_v10 }
  0xd5   : > { %1671 = vmatprep.mubr.msk.f32.mxu1 %vm453_vm0, %v345_v12 }
  0xd7   : > { %860 = vmatmul.mubr.f32.gmra.mrb[8].mxu0 %v243_v11 }
  0xd8   : > { %1672 = vmatmul.mubr.msk.f32.gmra.mrb[72].mxu1 %vm453_vm0, %v350_v14  ;;  %864 = vmatprep.mubr.f32.mxu0 %v249_v15 }
  0xd9   : > { %1674 = vmatprep.mubr.msk.f32.mxu1 %vm453_vm0, %v355_v16 }
  0xdb   : > { %865 = vmatmul.mubr.f32.gmra.mrb[10].mxu0 %v248_v18 }
  0xdc   : > { %1675 = vmatmul.mubr.msk.f32.gmra.mrb[74].mxu1 %vm453_vm0, %v360_v17  ;;  %869 = vmatprep.mubr.f32.mxu0 %v254_v19 }
  0xdd   : > { %1677 = vmatprep.mubr.msk.f32.mxu1 %vm453_vm0, %v365_v21 }
  0xdf   : > { %870 = vmatmul.mubr.f32.gmra.mrb[12].mxu0 %v253_v24 }
  0xe0   : > { %1678 = vmatmul.mubr.msk.f32.gmra.mrb[76].mxu1 %vm453_vm0, %v370_v22  ;;  %874 = vmatprep.mubr.f32.mxu0 %v259_v23 }
  0xe1   : > { %1680 = vmatprep.mubr.msk.f32.mxu1 %vm453_vm0, %v375_v25 }
  0xe3   : > { %875 = vmatmul.mubr.f32.gmra.mrb[14].mxu0 %v258_v30 }
  0xe4   : > { %1681 = vmatmul.mubr.msk.f32.gmra.mrb[78].mxu1 %vm453_vm0, %v380_v26 }
 0x11b   : > { %v881_v28 = vpop.f32.mrb[0].mxu1 }
 0x11c   : > { %v883_v29 = vpop.f32.mrb[1].mxu1 }
 0x11f   : > { %v886_v36 = vpop.f32.mrb[2].mxu1 }
 0x120   : > { %v888_v31 = vpop.f32.mrb[3].mxu1 }
 0x123   : > { %v891_v32 = vpop.f32.mrb[4].mxu1 }
 0x124   : > { %v893_v33 = vpop.f32.mrb[5].mxu1 }
 0x127   : > { %v896_v44 = vpop.f32.mrb[6].mxu1 }
 0x128   : > { %v898_v35 = vpop.f32.mrb[7].mxu1 }
 0x12b   : > { %v901_v37 = vpop.f32.mrb[8].mxu1 }
 0x12c   : > { %v903_v38 = vpop.f32.mrb[9].mxu1 }
 0x12f   : > { %v906_v50 = vpop.f32.mrb[10].mxu1 }
 0x130   : > { %v908_v39 = vpop.f32.mrb[11].mxu1 }
 0x133   : > { %v911_v40 = vpop.f32.mrb[12].mxu1 }
 0x134   : > { %v913_v41 = vpop.f32.mrb[13].mxu1 }
 0x137   : > { %v916_v56 = vpop.f32.mrb[14].mxu1 }
 0x138   : > { %v918_v42 = vpop.f32.mrb[15].mxu1 }
 0x13a   : > { %v656_v45 = vpop.f32.mrb[16].mxu0 }
 0x13b   : > { %v658_v46 = vpop.f32.mrb[17].mxu0  ;;  %v2450_v62 = vadd.f32 %v881_v28, %v656_v45  ;;  %v921_v47 = vpop.f32.mrb[16].mxu1 }
 0x13c   : > { %v923_v48 = vpop.f32.mrb[17].mxu1 }
 0x13e   : > { %v661_v49 = vpop.f32.mrb[18].mxu0 }
 0x13f   : > { %v663_v5 = vpop.f32.mrb[19].mxu0  ;;  %v2452_v51 = vadd.f32 %v886_v36, %v661_v49  ;;  %v926_v52 = vpop.f32.mrb[18].mxu1 }
 0x140   : > { %v928_v53 = vpop.f32.mrb[19].mxu1 }
 0x142   : > { %v666_v13 = vpop.f32.mrb[20].mxu0 }
 0x143   : > { %v668_v54 = vpop.f32.mrb[21].mxu0  ;;  %v2454_v55 = vadd.f32 %v891_v32, %v666_v13  ;;  %v931_v57 = vpop.f32.mrb[20].mxu1 }
 0x144   : > { %v933_v20 = vpop.f32.mrb[21].mxu1 }
 0x146   : > { %v671_v58 = vpop.f32.mrb[22].mxu0 }
 0x147   : > { %v673_v59 = vpop.f32.mrb[23].mxu0  ;;  %v2456_v60 = vadd.f32 %v896_v44, %v671_v58  ;;  %v936_v27 = vpop.f32.mrb[22].mxu1 }
 0x148   : > { %v938_v8 = vpop.f32.mrb[23].mxu1 }
 0x14a   : > { %v676_v61 = vpop.f32.mrb[24].mxu0 }
 0x14b   : > { %v678_v63 = vpop.f32.mrb[25].mxu0  ;;  %v2458_v3 = vadd.f32 %v901_v37, %v676_v61  ;;  %v941_v34 = vpop.f32.mrb[24].mxu1 }
 0x14c   : > { %v943_v0 = vpop.f32.mrb[25].mxu1 }
 0x14e   : > { %v681_v1 = vpop.f32.mrb[26].mxu0 }
 0x14f   : > { %v683_v2 = vpop.f32.mrb[27].mxu0  ;;  %v2460_v43 = vadd.f32 %v906_v50, %v681_v1  ;;  %v946_v4 = vpop.f32.mrb[26].mxu1 }
 0x150   : > { %v948_v6 = vpop.f32.mrb[27].mxu1 }
 0x152   : > { %v686_v7 = vpop.f32.mrb[28].mxu0 }
 0x153   : > { %v688_v9 = vpop.f32.mrb[29].mxu0  ;;  %v2462_v10 = vadd.f32 %v911_v40, %v686_v7  ;;  %v951_v12 = vpop.f32.mrb[28].mxu1 }
 0x154   : > { %v953_v11 = vpop.f32.mrb[29].mxu1 }
 0x156   : > { %v691_v14 = vpop.f32.mrb[30].mxu0 }
 0x157   : > { %v693_v15 = vpop.f32.mrb[31].mxu0  ;;  %v2464_v16 = vadd.f32 %v916_v56, %v691_v14  ;;  %v956_v18 = vpop.f32.mrb[30].mxu1 }
 0x158   : > { %v958_v17 = vpop.f32.mrb[31].mxu1 }
 0x15a   : > { %v696_v19 = vpop.f32.mrb[32].mxu0 }
 0x15b   : > { %v698_v21 = vpop.f32.mrb[33].mxu0  ;;  %v2466_v24 = vadd.f32 %v921_v47, %v696_v19  ;;  %v961_v22 = vpop.f32.mrb[32].mxu1 }
 0x15c   : > { %v963_v23 = vpop.f32.mrb[33].mxu1 }
 0x15e   : > { %v701_v25 = vpop.f32.mrb[34].mxu0 }
 0x15f   : > { %v703_v30 = vpop.f32.mrb[35].mxu0  ;;  %v2468_v26 = vadd.f32 %v926_v52, %v701_v25  ;;  %v966_v28 = vpop.f32.mrb[34].mxu1 }
 0x160   : > { %v968_v29 = vpop.f32.mrb[35].mxu1 }
 0x162   : > { %v706_v36 = vpop.f32.mrb[36].mxu0 }
 0x163   : > { %v708_v31 = vpop.f32.mrb[37].mxu0  ;;  %v2470_v32 = vadd.f32 %v931_v57, %v706_v36  ;;  %v971_v33 = vpop.f32.mrb[36].mxu1 }
 0x164   : > { %v973_v44 = vpop.f32.mrb[37].mxu1 }
 0x166   : > { %v711_v35 = vpop.f32.mrb[38].mxu0 }
 0x167   : > { %v713_v37 = vpop.f32.mrb[39].mxu0  ;;  %v2472_v38 = vadd.f32 %v936_v27, %v711_v35  ;;  %v976_v50 = vpop.f32.mrb[38].mxu1 }
 0x168   : > { %v978_v39 = vpop.f32.mrb[39].mxu1 }
 0x16a   : > { %v716_v40 = vpop.f32.mrb[40].mxu0 }
 0x16b   : > { %v2474_v41 = vadd.f32 %v941_v34, %v716_v40  ;;  %v718_v56 = vpop.f32.mrb[41].mxu0  ;;  %v981_v42 = vpop.f32.mrb[40].mxu1 }
 0x16c   : > { %v983_v45 = vpop.f32.mrb[41].mxu1 }
 0x16e   : > { %v721_v46 = vpop.f32.mrb[42].mxu0 }
 0x16f   : > { %v2476_v47 = vadd.f32 %v946_v4, %v721_v46  ;;  %v723_v48 = vpop.f32.mrb[43].mxu0  ;;  %v986_v49 = vpop.f32.mrb[42].mxu1 }
 0x170   : > { %v988_v5 = vpop.f32.mrb[43].mxu1 }
 0x172   : > { %v726_v52 = vpop.f32.mrb[44].mxu0 }
 0x173   : > { %v2478_v53 = vadd.f32 %v951_v12, %v726_v52  ;;  %v728_v13 = vpop.f32.mrb[45].mxu0  ;;  %v991_v54 = vpop.f32.mrb[44].mxu1 }
 0x174   : > { %v993_v57 = vpop.f32.mrb[45].mxu1 }
 0x176   : > { %v731_v20 = vpop.f32.mrb[46].mxu0 }
 0x177   : > { %v2480_v58 = vadd.f32 %v956_v18, %v731_v20  ;;  %v733_v59 = vpop.f32.mrb[47].mxu0  ;;  %v996_v27 = vpop.f32.mrb[46].mxu1 }
 0x178   : > { %v998_v8 = vpop.f32.mrb[47].mxu1 }
 0x17a   : > { %v736_v61 = vpop.f32.mrb[48].mxu0 }
 0x17b   : > { %v2482_v63 = vadd.f32 %v961_v22, %v736_v61  ;;  %v738_v34 = vpop.f32.mrb[49].mxu0  ;;  %v2484_v0 = vpop.f32.mrb[48].mxu1 }
 0x17c   : > { %v1066_v1 = vpop.f32.mrb[49].mxu1 }
 0x17e   : > { %v741_v2 = vpop.f32.mrb[50].mxu0 }
 0x17f   : > { %v2486_v4 = vadd.f32 %v966_v28, %v741_v2  ;;  %v743_v6 = vpop.f32.mrb[51].mxu0  ;;  %v2488_v7 = vpop.f32.mrb[50].mxu1 }
 0x180   : > { %v2490_v9 = vpop.f32.mrb[51].mxu1 }
 0x182   : > { %v746_v12 = vpop.f32.mrb[52].mxu0 }
 0x183   : > { %v2492_v11 = vadd.f32 %v971_v33, %v746_v12  ;;  %v748_v14 = vpop.f32.mrb[53].mxu0  ;;  %v2494_v15 = vpop.f32.mrb[52].mxu1 }
 0x184   : > { %v2496_v18 = vpop.f32.mrb[53].mxu1 }
 0x186   : > { %v751_v17 = vpop.f32.mrb[54].mxu0 }
 0x187   : > { %v2498_v19 = vadd.f32 %v976_v50, %v751_v17  ;;  %v753_v21 = vpop.f32.mrb[55].mxu0  ;;  %v2500_v22 = vpop.f32.mrb[54].mxu1 }
 0x188   : > { %v2502_v23 = vpop.f32.mrb[55].mxu1 }
 0x18a   : > { %v756_v25 = vpop.f32.mrb[56].mxu0 }
 0x18b   : > { %v2505_v30 = vadd.f32 %v981_v42, %v756_v25  ;;  %v1649_v28 = vpop.f32.mrb[56].mxu1  ;;  %v758_v29 = vpop.f32.mrb[57].mxu0 }
 0x18c   : > { %v2513_v36 = vadd.f32 %v1649_v28, %v2452_v51  ;;  %v1106_v31 = vpop.f32.mrb[57].mxu1 }
 0x18d   : > { %v2516_v33 = vadd.f32 %v1106_v31, %v2450_v62 }
 0x18e   : > { %1234 = vst.msk [vmem:[%s2510_s8 + $0x48] sm:$0xff] %vm453_vm0, %v2513_v36  ;;  %v761_v44 = vpop.f32.mrb[58].mxu0 }
 0x18f   : > { %1233 = vst.msk [vmem:[%s2510_s8 + $0x40] sm:$0xff] %vm453_vm0, %v2516_v33  ;;  %v2524_v35 = vadd.f32 %v986_v49, %v761_v44  ;;  %v1652_v37 = vpop.f32.mrb[58].mxu1  ;;  %v763_v50 = vpop.f32.mrb[59].mxu0 }
 0x190   : > { %v2527_v51 = vadd.f32 %v1652_v37, %v2456_v60  ;;  %v1116_v39 = vpop.f32.mrb[59].mxu1 }
 0x191   : > { %v2530_v62 = vadd.f32 %v1116_v39, %v2454_v55 }
 0x192   : > { %1236 = vst.msk [vmem:[%s2510_s8 + $0x58] sm:$0xff] %vm453_vm0, %v2527_v51  ;;  %v766_v40 = vpop.f32.mrb[60].mxu0 }
 0x193   : > { %1235 = vst.msk [vmem:[%s2510_s8 + $0x50] sm:$0xff] %vm453_vm0, %v2530_v62  ;;  %v2538_v56 = vadd.f32 %v991_v54, %v766_v40  ;;  %v1655_v42 = vpop.f32.mrb[60].mxu1  ;;  %v768_v45 = vpop.f32.mrb[61].mxu0 }
 0x194   : > { %v2541_v60 = vadd.f32 %v1655_v42, %v2460_v43  ;;  %v1126_v46 = vpop.f32.mrb[61].mxu1 }
 0x195   : > { %v2544_v55 = vadd.f32 %v1126_v46, %v2458_v3 }
 0x196   : > { %1238 = vst.msk [vmem:[%s2510_s8 + $0x68] sm:$0xff] %vm453_vm0, %v2541_v60  ;;  %v771_v48 = vpop.f32.mrb[62].mxu0 }
 0x197   : > { %1237 = vst.msk [vmem:[%s2510_s8 + $0x60] sm:$0xff] %vm453_vm0, %v2544_v55  ;;  %v2552_v49 = vadd.f32 %v996_v27, %v771_v48  ;;  %v1658_v5 = vpop.f32.mrb[62].mxu1  ;;  %v773_v52 = vpop.f32.mrb[63].mxu0 }
 0x198   : > { %v2555_v43 = vadd.f32 %v1658_v5, %v2464_v16  ;;  %v1136_v13 = vpop.f32.mrb[63].mxu1 }
 0x199   : > { %v2558_v3 = vadd.f32 %v1136_v13, %v2462_v10 }
 0x19a   : > { %1240 = vst.msk [vmem:[%s2510_s8 + $0x78] sm:$0xff] %vm453_vm0, %v2555_v43  ;;  %v841_v54 = vpop.f32.mrb[0].mxu0 }
 0x19b   : > { %1239 = vst.msk [vmem:[%s2510_s8 + $0x70] sm:$0xff] %vm453_vm0, %v2558_v3  ;;  %v1067_v57 = vadd.f32 %v1066_v1, %v841_v54  ;;  %v1661_v20 = vpop.f32.mrb[64].mxu1  ;;  %v843_v59 = vpop.f32.mrb[1].mxu0 }
 0x19c   : > { %v2567_v27 = vadd.f32 %v1661_v20, %v2468_v26  ;;  %v1146_v16 = vpop.f32.mrb[65].mxu1 }
 0x19d   : > { %1225 = vst.msk [vmem:[%s2510_s8] sm:$0xff] %vm453_vm0, %v1067_v57  ;;  %v2572_v10 = vadd.f32 %v1146_v16, %v2466_v24  ;;  %v1328_v61 = vmul.f32 %v1067_v57, %v1067_v57  ;;  %v1257_v24 = vsel %vm453_vm0, %v1067_v57, 0.0 }
 0x19e   : > { %1242 = vst.msk [vmem:[%s2510_s8 + $0x88] sm:$0xff] %vm453_vm0, %v2567_v27  ;;  %v846_v8 = vpop.f32.mrb[2].mxu0 }
 0x19f   : > { %1241 = vst.msk [vmem:[%s2510_s8 + $0x80] sm:$0xff] %vm453_vm0, %v2572_v10  ;;  %v1072_v34 = vadd.f32 %v2484_v0, %v846_v8  ;;  %v1664_v26 = vpop.f32.mrb[66].mxu1  ;;  %v848_v1 = vpop.f32.mrb[3].mxu0 }
 0x1a0   : > { %v2582_v2 = vadd.f32 %v1664_v26, %v2472_v38  ;;  %v1156_v6 = vpop.f32.mrb[67].mxu1  ;;  %v1360_v38 = vsel %vm453_vm0, %v1328_v61, 0.0 }
 0x1a1   : > { %1226 = vst.msk [vmem:[%s2510_s8 + $0x8] sm:$0xff] %vm453_vm0, %v1072_v34  ;;  %v1258_v12 = vsel %vm453_vm0, %v1072_v34, 0.0  ;;  %v1329_v14 = vmul.f32 %v1072_v34, %v1072_v34  ;;  %v2589_v17 = vadd.f32 %v1156_v6, %v2470_v32 }
 0x1a2   : > { %v1259_v21 = vadd.f32 %v1258_v12, %v1257_v24  ;;  %1244 = vst.msk [vmem:[%s2510_s8 + $0x98] sm:$0xff] %vm453_vm0, %v2582_v2  ;;  %v851_v0 = vpop.f32.mrb[4].mxu0 }
 0x1a3   : > { %v1361_v25 = vsel %vm453_vm0, %v1329_v14, 0.0  ;;  %1243 = vst.msk [vmem:[%s2510_s8 + $0x90] sm:$0xff] %vm453_vm0, %v2589_v17  ;;  %v1077_v28 = vadd.f32 %v2490_v9, %v851_v0  ;;  %v1667_v29 = vpop.f32.mrb[68].mxu1  ;;  %v853_v31 = vpop.f32.mrb[5].mxu0 }
 0x1a4   : > { %v1362_v32 = vadd.f32 %v1361_v25, %v1360_v38  ;;  %v2601_v44 = vadd.f32 %v1667_v29, %v2476_v47  ;;  %v1166_v37 = vpop.f32.mrb[69].mxu1 }
 0x1a5   : > { %1227 = vst.msk [vmem:[%s2510_s8 + $0x10] sm:$0xff] %vm453_vm0, %v1077_v28  ;;  %v1260_v50 = vsel %vm453_vm0, %v1077_v28, 0.0  ;;  %v1330_v39 = vmul.f32 %v1077_v28, %v1077_v28  ;;  %v2607_v40 = vadd.f32 %v1166_v37, %v2474_v41 }
 0x1a6   : > { %v1261_v42 = vadd.f32 %v1260_v50, %v1259_v21  ;;  %1246 = vst.msk [vmem:[%s2510_s8 + $0xa8] sm:$0xff] %vm453_vm0, %v2601_v44  ;;  %v856_v9 = vpop.f32.mrb[6].mxu0 }
 0x1a7   : > { %v1363_v45 = vsel %vm453_vm0, %v1330_v39, 0.0  ;;  %1245 = vst.msk [vmem:[%s2510_s8 + $0xa0] sm:$0xff] %vm453_vm0, %v2607_v40  ;;  %v1082_v47 = vadd.f32 %v2488_v7, %v856_v9  ;;  %v1670_v46 = vpop.f32.mrb[70].mxu1  ;;  %v858_v48 = vpop.f32.mrb[7].mxu0 }
 0x1a8   : > { %v1364_v5 = vadd.f32 %v1363_v45, %v1362_v32  ;;  %v2618_v41 = vadd.f32 %v1670_v46, %v2480_v58  ;;  %v1176_v52 = vpop.f32.mrb[71].mxu1 }
 0x1a9   : > { %1228 = vst.msk [vmem:[%s2510_s8 + $0x18] sm:$0xff] %vm453_vm0, %v1082_v47  ;;  %v1262_v13 = vsel %vm453_vm0, %v1082_v47, 0.0  ;;  %v1331_v54 = vmul.f32 %v1082_v47, %v1082_v47  ;;  %v2624_v57 = vadd.f32 %v1176_v52, %v2478_v53 }
 0x1aa   : > { %v1263_v20 = vadd.f32 %v1262_v13, %v1261_v42  ;;  %1248 = vst.msk [vmem:[%s2510_s8 + $0xb8] sm:$0xff] %vm453_vm0, %v2618_v41  ;;  %v861_v7 = vpop.f32.mrb[8].mxu0 }
 0x1ab   : > { %v1365_v59 = vsel %vm453_vm0, %v1331_v54, 0.0  ;;  %1247 = vst.msk [vmem:[%s2510_s8 + $0xb0] sm:$0xff] %vm453_vm0, %v2624_v57  ;;  %v1087_v58 = vadd.f32 %v2496_v18, %v861_v7  ;;  %v1673_v16 = vpop.f32.mrb[72].mxu1  ;;  %v863_v8 = vpop.f32.mrb[9].mxu0 }
 0x1ac   : > { %v1366_v61 = vadd.f32 %v1365_v59, %v1364_v5  ;;  %v2635_v53 = vadd.f32 %v1673_v16, %v2486_v4  ;;  %v1186_v34 = vpop.f32.mrb[73].mxu1  ;;  %v1272_v16 = vsel %vm453_vm0, %v2516_v33, 0.0 }
 0x1ad   : > { %1229 = vst.msk [vmem:[%s2510_s8 + $0x20] sm:$0xff] %vm453_vm0, %v1087_v58  ;;  %v1264_v26 = vsel %vm453_vm0, %v1087_v58, 0.0  ;;  %v1332_v1 = vmul.f32 %v1087_v58, %v1087_v58  ;;  %v2641_v6 = vadd.f32 %v1186_v34, %v2482_v63 }
 0x1ae   : > { %v1265_v24 = vadd.f32 %v1264_v26, %v1263_v20  ;;  %1250 = vst.msk [vmem:[%s2510_s8 + $0xc8] sm:$0xff] %vm453_vm0, %v2635_v53  ;;  %v866_v18 = vpop.f32.mrb[10].mxu0  ;;  %v1336_v20 = vmul.f32 %v2516_v33, %v2516_v33  ;;  %v1339_v33 = vmul.f32 %v2527_v51, %v2527_v51 }
 0x1af   : > { %v1367_v12 = vsel %vm453_vm0, %v1332_v1, 0.0  ;;  %1249 = vst.msk [vmem:[%s2510_s8 + $0xc0] sm:$0xff] %vm453_vm0, %v2641_v6  ;;  %v1092_v4 = vadd.f32 %v2494_v15, %v866_v18  ;;  %v1676_v14 = vpop.f32.mrb[74].mxu1  ;;  %v868_v21 = vpop.f32.mrb[11].mxu0  ;;  %v1338_v1 = vmul.f32 %v2530_v62, %v2530_v62 }
 0x1b0   : > { %v1368_v0 = vadd.f32 %v1367_v12, %v1366_v61  ;;  %v2652_v63 = vadd.f32 %v1676_v14, %v2498_v19  ;;  %v1196_v38 = vpop.f32.mrb[75].mxu1  ;;  %v1375_v26 = vsel %vm453_vm0, %v1336_v20, 0.0 }
 0x1b1   : > { %1230 = vst.msk [vmem:[%s2510_s8 + $0x28] sm:$0xff] %vm453_vm0, %v1092_v4  ;;  %v1266_v25 = vsel %vm453_vm0, %v1092_v4, 0.0  ;;  %v1333_v28 = vmul.f32 %v1092_v4, %v1092_v4  ;;  %v2658_v29 = vadd.f32 %v1196_v38, %v2492_v11  ;;  %v1276_v4 = vsel %vm453_vm0, %v2530_v62, 0.0 }
 0x1b2   : > { %v1267_v31 = vadd.f32 %v1266_v25, %v1265_v24  ;;  %1252 = vst.msk [vmem:[%s2510_s8 + $0xd8] sm:$0xff] %vm453_vm0, %v2652_v63  ;;  %v871_v15 = vpop.f32.mrb[12].mxu0  ;;  %v1340_v38 = vmul.f32 %v2544_v55, %v2544_v55  ;;  %v1280_v62 = vsel %vm453_vm0, %v2544_v55, 0.0  ;;  %v1284_v55 = vsel %vm453_vm0, %v2558_v3, 0.0 }
 0x1b3   : > { %v1369_v32 = vsel %vm453_vm0, %v1333_v28, 0.0  ;;  %1251 = vst.msk [vmem:[%s2510_s8 + $0xd0] sm:$0xff] %vm453_vm0, %v2658_v29  ;;  %v1097_v19 = vadd.f32 %v2502_v23, %v871_v15  ;;  %v1679_v37 = vpop.f32.mrb[76].mxu1  ;;  %v873_v50 = vpop.f32.mrb[13].mxu0  ;;  %v1341_v15 = vmul.f32 %v2541_v60, %v2541_v60 }
 0x1b4   : > { %v1370_v39 = vadd.f32 %v1369_v32, %v1368_v0  ;;  %v2669_v11 = vadd.f32 %v1679_v37, %v2524_v35  ;;  %v1206_v42 = vpop.f32.mrb[77].mxu1  ;;  %v1379_v0 = vsel %vm453_vm0, %v1338_v1, 0.0  ;;  %v1383_v37 = vsel %vm453_vm0, %v1340_v38, 0.0 }
 0x1b5   : > { %1231 = vst.msk [vmem:[%s2510_s8 + $0x30] sm:$0xff] %vm453_vm0, %v1097_v19  ;;  %v1268_v9 = vsel %vm453_vm0, %v1097_v19, 0.0  ;;  %v1334_v45 = vmul.f32 %v1097_v19, %v1097_v19  ;;  %v2675_v47 = vadd.f32 %v1206_v42, %v2505_v30  ;;  %v1342_v50 = vmul.f32 %v2558_v3, %v2558_v3 }
 0x1b6   : > { %v1269_v46 = vadd.f32 %v1268_v9, %v1267_v31  ;;  %1254 = vst.msk [vmem:[%s2510_s8 + $0xe8] sm:$0xff] %vm453_vm0, %v2669_v11  ;;  %v876_v23 = vpop.f32.mrb[14].mxu0  ;;  %v1381_v31 = vsel %vm453_vm0, %v1339_v33, 0.0  ;;  %v1385_v9 = vsel %vm453_vm0, %v1341_v15, 0.0  ;;  %v1288_v3 = vsel %vm453_vm0, %v2572_v10, 0.0 }
 0x1b7   : > { %v1371_v48 = vsel %vm453_vm0, %v1334_v45, 0.0  ;;  %1253 = vst.msk [vmem:[%s2510_s8 + $0xe0] sm:$0xff] %vm453_vm0, %v2675_v47  ;;  %v1102_v35 = vadd.f32 %v2500_v22, %v876_v23  ;;  %v1682_v5 = vpop.f32.mrb[78].mxu1  ;;  %v878_v52 = vpop.f32.mrb[15].mxu0  ;;  %v1343_v45 = vmul.f32 %v2555_v43, %v2555_v43  ;;  %v1348_v1 = vmul.f32 %v2607_v40, %v2607_v40 }
 0x1b8   : > { %v1372_v13 = vadd.f32 %v1371_v48, %v1370_v39  ;;  %v2686_v30 = vadd.f32 %v1682_v5, %v2552_v49  ;;  %v1216_v54 = vpop.f32.mrb[79].mxu1  ;;  %v1337_v49 = vmul.f32 %v2513_v36, %v2513_v36  ;;  %v1387_v48 = vsel %vm453_vm0, %v1342_v50, 0.0 }
 0x1b9   : > { %1232 = vst.msk [vmem:[%s2510_s8 + $0x38] sm:$0xff] %vm453_vm0, %v1102_v35  ;;  %v1270_v7 = vsel %vm453_vm0, %v1102_v35, 0.0  ;;  %v1335_v59 = vmul.f32 %v1102_v35, %v1102_v35  ;;  %v2694_v58 = vadd.f32 %v1216_v54, %v2538_v56  ;;  %v1274_v56 = vsel %vm453_vm0, %v2513_v36, 0.0 }
 0x1ba   : > { %v1271_v22 = vadd.f32 %v1270_v7, %v1269_v46  ;;  %1256 = vst.msk [vmem:[%s2510_s8 + $0xf8] sm:$0xff] %vm453_vm0, %v2686_v30  ;;  %v1377_v12 = vsel %vm453_vm0, %v1337_v49, 0.0  ;;  %v1278_v36 = vsel %vm453_vm0, %v2527_v51, 0.0  ;;  %v1282_v51 = vsel %vm453_vm0, %v2541_v60, 0.0 }
 0x1bb   : > { %v1373_v8 = vsel %vm453_vm0, %v1335_v59, 0.0  ;;  %1255 = vst.msk [vmem:[%s2510_s8 + $0xf0] sm:$0xff] %vm453_vm0, %v2694_v58  ;;  %v1286_v60 = vsel %vm453_vm0, %v2555_v43, 0.0  ;;  %v1344_v35 = vmul.f32 %v2572_v10, %v2572_v10  ;;  %v1345_v54 = vmul.f32 %v2567_v27, %v2567_v27 }
 0x1bc   : > { %v1273_v61 = vadd.f32 %v1272_v16, %v1271_v22  ;;  %v1374_v34 = vadd.f32 %v1373_v8, %v1372_v13  ;;  %v1389_v13 = vsel %vm453_vm0, %v1343_v45, 0.0  ;;  %v1290_v43 = vsel %vm453_vm0, %v2567_v27, 0.0 }
 0x1bd   : > { %v1391_v59 = vsel %vm453_vm0, %v1344_v35, 0.0  ;;  %v1346_v22 = vmul.f32 %v2589_v17, %v2589_v17  ;;  %v1393_v8 = vsel %vm453_vm0, %v1345_v54, 0.0  ;;  %v1292_v10 = vsel %vm453_vm0, %v2589_v17, 0.0 }
 0x1be   : > { %v1275_v24 = vadd.f32 %v1274_v56, %v1273_v61  ;;  %v1376_v18 = vadd.f32 %v1375_v26, %v1374_v34  ;;  %v1347_v61 = vmul.f32 %v2582_v2, %v2582_v2  ;;  %v1294_v27 = vsel %vm453_vm0, %v2582_v2, 0.0 }
 0x1bf   : > { %v1395_v26 = vsel %vm453_vm0, %v1346_v22, 0.0  ;;  %v1349_v33 = vmul.f32 %v2601_v44, %v2601_v44  ;;  %v1296_v17 = vsel %vm453_vm0, %v2607_v40, 0.0  ;;  %v1298_v2 = vsel %vm453_vm0, %v2601_v44, 0.0 }
 0x1c0   : > { %v1277_v14 = vadd.f32 %v1276_v4, %v1275_v24  ;;  %v1378_v21 = vadd.f32 %v1377_v12, %v1376_v18  ;;  %v1397_v12 = vsel %vm453_vm0, %v1347_v61, 0.0  ;;  %v1300_v40 = vsel %vm453_vm0, %v2624_v57, 0.0 }
 0x1c1   : > { %v1302_v44 = vsel %vm453_vm0, %v2618_v41, 0.0  ;;  %v1353_v50 = vmul.f32 %v2635_v53, %v2635_v53  ;;  %v1354_v45 = vmul.f32 %v2658_v29, %v2658_v29  ;;  %v1358_v22 = vmul.f32 %v2694_v58, %v2694_v58 }
 0x1c2   : > { %v1279_v25 = vadd.f32 %v1278_v36, %v1277_v14  ;;  %v1380_v28 = vadd.f32 %v1379_v0, %v1378_v21  ;;  %v1399_v21 = vsel %vm453_vm0, %v1348_v1, 0.0  ;;  %v1350_v36 = vmul.f32 %v2624_v57, %v2624_v57 }
 0x1c3   : > { %v1304_v57 = vsel %vm453_vm0, %v2641_v6, 0.0  ;;  %v1359_v61 = vmul.f32 %v2686_v30, %v2686_v30 }
 0x1c4   : > { %v1281_v32 = vadd.f32 %v1280_v62, %v1279_v25  ;;  %v1382_v19 = vadd.f32 %v1381_v31, %v1380_v28  ;;  %v1401_v25 = vsel %vm453_vm0, %v1349_v33, 0.0  ;;  %v1351_v28 = vmul.f32 %v2618_v41, %v2618_v41 }
 0x1c5   : > { %v1403_v62 = vsel %vm453_vm0, %v1350_v36, 0.0  ;;  %v1306_v41 = vsel %vm453_vm0, %v2635_v53, 0.0  ;;  %v1310_v53 = vsel %vm453_vm0, %v2652_v63, 0.0  ;;  %v1421_v1 = vsel %vm453_vm0, %v1359_v61, 0.0 }
 0x1c6   : > { %v1283_v39 = vadd.f32 %v1282_v51, %v1281_v32  ;;  %v1384_v42 = vadd.f32 %v1383_v37, %v1382_v19  ;;  %v1352_v32 = vmul.f32 %v2641_v6, %v2641_v6  ;;  %v1405_v37 = vsel %vm453_vm0, %v1351_v28, 0.0 }
 0x1c7   : > { %v1308_v6 = vsel %vm453_vm0, %v2658_v29, 0.0  ;;  %v1312_v29 = vsel %vm453_vm0, %v2675_v47, 0.0 }
 0x1c8   : > { %v1285_v46 = vadd.f32 %v1284_v55, %v1283_v39  ;;  %v1386_v23 = vadd.f32 %v1385_v9, %v1384_v42  ;;  %v1407_v9 = vsel %vm453_vm0, %v1352_v32, 0.0 }
 0x1ca   : > { %v1287_v5 = vadd.f32 %v1286_v60, %v1285_v46  ;;  %v1388_v52 = vadd.f32 %v1387_v48, %v1386_v23  ;;  %v1409_v23 = vsel %vm453_vm0, %v1353_v50, 0.0  ;;  %v1355_v60 = vmul.f32 %v2652_v63, %v2652_v63 }
 0x1cb   : > { %v1314_v63 = vsel %vm453_vm0, %v2669_v11, 0.0 }
 0x1cc   : > { %v1289_v20 = vadd.f32 %v1288_v3, %v1287_v5  ;;  %v1390_v7 = vadd.f32 %v1389_v13, %v1388_v52  ;;  %v1411_v5 = vsel %vm453_vm0, %v1354_v45, 0.0  ;;  %v1356_v52 = vmul.f32 %v2675_v47, %v2675_v47 }
 0x1cd   : > { %v1413_v3 = vsel %vm453_vm0, %v1355_v60, 0.0  ;;  %v1316_v47 = vsel %vm453_vm0, %v2694_v58, 0.0 }
 0x1ce   : > { %v1291_v49 = vadd.f32 %v1290_v43, %v1289_v20  ;;  %v1392_v16 = vadd.f32 %v1391_v59, %v1390_v7  ;;  %v1357_v20 = vmul.f32 %v2669_v11, %v2669_v11  ;;  %v1415_v59 = vsel %vm453_vm0, %v1356_v52, 0.0 }
 0x1cf   : > { %v1318_v11 = vsel %vm453_vm0, %v2686_v30, 0.0 }
 0x1d0   : > { %v1293_v34 = vadd.f32 %v1292_v10, %v1291_v49  ;;  %v1394_v56 = vadd.f32 %v1393_v8, %v1392_v16  ;;  %v1417_v8 = vsel %vm453_vm0, %v1357_v20, 0.0 }
 0x1d2   : > { %v1396_v24 = vadd.f32 %v1395_v26, %v1394_v56  ;;  %v1295_v18 = vadd.f32 %v1294_v27, %v1293_v34  ;;  %v1419_v56 = vsel %vm453_vm0, %v1358_v22, 0.0 }
 0x1d4   : > { %v1297_v4 = vadd.f32 %v1296_v17, %v1295_v18  ;;  %v1398_v14 = vadd.f32 %v1397_v12, %v1396_v24 }
 0x1d6   : > { %v1299_v0 = vadd.f32 %v1298_v2, %v1297_v4  ;;  %v1400_v38 = vadd.f32 %v1399_v21, %v1398_v14 }
 0x1d8   : > { %v1301_v31 = vadd.f32 %v1300_v40, %v1299_v0  ;;  %v1402_v15 = vadd.f32 %v1401_v25, %v1400_v38 }
 0x1da   : > { %v1303_v19 = vadd.f32 %v1302_v44, %v1301_v31  ;;  %v1404_v51 = vadd.f32 %v1403_v62, %v1402_v15 }
 0x1dc   : > { %v1305_v39 = vadd.f32 %v1304_v57, %v1303_v19  ;;  %v1406_v42 = vadd.f32 %v1405_v37, %v1404_v51 }
 0x1de   : > { %v1307_v55 = vadd.f32 %v1306_v41, %v1305_v39  ;;  %v1408_v46 = vadd.f32 %v1407_v9, %v1406_v42 }
 0x1e0   : > { %v1309_v48 = vadd.f32 %v1308_v6, %v1307_v55  ;;  %v1410_v35 = vadd.f32 %v1409_v23, %v1408_v46 }
 0x1e2   : > { %v1311_v13 = vadd.f32 %v1310_v53, %v1309_v48  ;;  %v1412_v54 = vadd.f32 %v1411_v5, %v1410_v35 }
 0x1e4   : > { %v1313_v7 = vadd.f32 %v1312_v29, %v1311_v13  ;;  %v1414_v43 = vadd.f32 %v1413_v3, %v1412_v54 }
 0x1e6   : > { %v1315_v49 = vadd.f32 %v1314_v63, %v1313_v7  ;;  %v1416_v16 = vadd.f32 %v1415_v59, %v1414_v43 }
 0x1e8   : > { %v1317_v10 = vadd.f32 %v1316_v47, %v1315_v49  ;;  %v1418_v34 = vadd.f32 %v1417_v8, %v1416_v16 }
 0x1ea   : > { %v1319_v27 = vadd.f32 %v1318_v11, %v1317_v10  ;;  %v1420_v26 = vadd.f32 %v1419_v56, %v1418_v34 }
 0x1ec   : > { %v1320_v24 = vrot.slane %v1319_v27, 4  ;;  %v1422_v18 = vadd.f32 %v1421_v1, %v1420_v26 }
 0x1ee   : > { %v1321_v12 = vadd.f32 %v1320_v24, %v1319_v27  ;;  %v1423_v33 = vrot.slane %v1422_v18, 4 }
 0x1f0   : > { %v1322_v17 = vrot.slane %v1321_v12, 2  ;;  %v1424_v4 = vadd.f32 %v1423_v33, %v1422_v18 }
 0x1f2   : > { %v1323_v58 = vadd.f32 %v1322_v17, %v1321_v12  ;;  %v1425_v14 = vrot.slane %v1424_v4, 2 }
 0x1f4   : > { %v1324_v2 = vrot.slane %v1323_v58, 1  ;;  %v1426_v21 = vadd.f32 %v1425_v14, %v1424_v4 }
 0x1f6   : > { %v1325_v30 = vadd.f32 %v1324_v2, %v1323_v58  ;;  %v1427_v36 = vrot.slane %v1426_v21, 1 }
 0x1f8   : > { %1327 = vst.msk [vmem:[%s217_s10] sm:$0x1] %vm1326_vm1, %v1325_v30  ;;  %v1428_v0 = vadd.f32 %v1427_v36, %v1426_v21 }
 0x1fa   : > { %1429 = vst.msk [vmem:[%s220_s13] sm:$0x1] %vm1326_vm1, %v1428_v0 }
 0x1fb PF: > { %s15_s15 = sadd.s32 1, %s1883_s15  }
 0x1fc   : > { %p12_p5 = scmp.ge.s32.totalorder %s15_s15, 4  }
 0x1fe   :  { %14 = sbr.rel (!%p12_p5) target bundleno = 1 (0x1), region = 82 }

// kernel: residual_block.5
= control target key start
LH: loop header
LB: loop body
LE: loop exit
PB: predicated region body
PF: predicated region fallthrough
CT: control target
= control target key end

     0   :  { %s480_s0 = inlined_call_operand.vmem [shape: f32[1,128], index: 0, kind: input, shape index: {}]   ;;  %s481_s1 = inlined_call_operand.vmem [shape: f32[1,128], index: 1, kind: input, shape index: {}]   ;;  %s482_s2 = inlined_call_operand.vmem [shape: f32[256,128], index: 2, kind: input, shape index: {}]   ;;  %s483_s3 = inlined_call_operand.vmem [shape: f32[256,128], index: 3, kind: output, shape index: {}]  }
   0x1   :  { %v14_v0 = vld [vmem:[%s482_s2] sm:$0xff]  ;;  %v15_v4 = vld [vmem:[%s482_s2 + $0x8] sm:$0xff]  ;;  %v16_v5 = vld [vmem:[%s482_s2 + $0x10] sm:$0xff] }
   0x2   :  { %v220_v1 = vld [vmem:[%s480_s0] ss:$0 sm:$0xff]  ;;  %v17_v6 = vld [vmem:[%s482_s2 + $0x18] sm:$0xff]  ;;  %v19_v11 = vld [vmem:[%s482_s2 + $0x28] sm:$0xff] }
   0x3   :  { %v225_v2 = vld [vmem:[%s481_s1] ss:$0 sm:$0xff]  ;;  %v53_v3 = vmul.f32 %v220_v1, %v14_v0  ;;  %v54_v7 = vmul.f32 %v220_v1, %v15_v4  ;;  %v55_v8 = vmul.f32 %v220_v1, %v16_v5  ;;  %v56_v9 = vmul.f32 %v220_v1, %v17_v6  ;;  %v20_v12 = vld [vmem:[%s482_s2 + $0x30] sm:$0xff]  ;;  %v21_v17 = vld [vmem:[%s482_s2 + $0x38] sm:$0xff] }
   0x4   :  { %v18_v10 = vld [vmem:[%s482_s2 + $0x20] sm:$0xff]  ;;  %v58_v15 = vmul.f32 %v220_v1, %v19_v11  ;;  %v59_v16 = vmul.f32 %v220_v1, %v20_v12  ;;  %v60_v21 = vmul.f32 %v220_v1, %v21_v17  ;;  %v23_v27 = vld [vmem:[%s482_s2 + $0x48] sm:$0xff]  ;;  %v24_v28 = vld [vmem:[%s482_s2 + $0x50] sm:$0xff] }
   0x5   :  { %v92_v13 = vadd.f32 %v225_v2, %v53_v3  ;;  %v57_v14 = vmul.f32 %v220_v1, %v18_v10  ;;  %v93_v18 = vadd.f32 %v225_v2, %v54_v7  ;;  %v94_v19 = vadd.f32 %v225_v2, %v55_v8  ;;  %v22_v22 = vld [vmem:[%s482_s2 + $0x40] sm:$0xff]  ;;  %v25_v29 = vld [vmem:[%s482_s2 + $0x58] sm:$0xff]  ;;  %v27_v35 = vld [vmem:[%s482_s2 + $0x68] sm:$0xff] }
   0x6   :  { %v95_v20 = vadd.f32 %v225_v2, %v56_v9  ;;  %v97_v25 = vadd.f32 %v225_v2, %v58_v15  ;;  %v98_v26 = vadd.f32 %v225_v2, %v59_v16  ;;  %v99_v33 = vadd.f32 %v225_v2, %v60_v21  ;;  %v26_v34 = vld [vmem:[%s482_s2 + $0x60] sm:$0xff]  ;;  %v28_v36 = vld [vmem:[%s482_s2 + $0x70] sm:$0xff]  ;;  %v29_v41 = vld [vmem:[%s482_s2 + $0x78] sm:$0xff] }
   0x7   :  { %v124_v23 = vmax.f32 %v92_v13, 0.0  ;;  %v96_v24 = vadd.f32 %v225_v2, %v57_v14  ;;  %v125_v30 = vmax.f32 %v93_v18, 0.0  ;;  %v126_v31 = vmax.f32 %v94_v19, 0.0  ;;  %v30_v54 = vld [vmem:[%s482_s2 + $0x80] sm:$0xff]  ;;  %v31_v59 = vld [vmem:[%s482_s2 + $0x88] sm:$0xff]  ;;  %v32_v60 = vld [vmem:[%s482_s2 + $0x90] sm:$0xff] }
   0x8   :  { %v127_v32 = vmax.f32 %v95_v20, 0.0  ;;  %v129_v38 = vmax.f32 %v97_v25, 0.0  ;;  %v130_v39 = vmax.f32 %v98_v26, 0.0  ;;  %v61_v40 = vmul.f32 %v220_v1, %v22_v22  ;;  %v33_v61 = vld [vmem:[%s482_s2 + $0x98] sm:$0xff]  ;;  %v34_v4 = vld [vmem:[%s482_s2 + $0xa0] sm:$0xff]  ;;  %v35_v5 = vld [vmem:[%s482_s2 + $0xa8] sm:$0xff] }
   0x9   :  { %156 = vst [vmem:[%s483_s3] sm:$0xff] %v124_v23  ;;  %v128_v37 = vmax.f32 %v96_v24, 0.0  ;;  %157 = vst [vmem:[%s483_s3 + $0x8] sm:$0xff] %v125_v30  ;;  %v131_v42 = vmax.f32 %v99_v33, 0.0  ;;  %v62_v43 = vmul.f32 %v220_v1, %v23_v27  ;;  %v63_v44 = vmul.f32 %v220_v1, %v24_v28  ;;  %v36_v6 = vld [vmem:[%s482_s2 + $0xb0] sm:$0xff]  ;;  %v37_v11 = vld [vmem:[%s482_s2 + $0xb8] sm:$0xff] }
   0xa   :  { %158 = vst [vmem:[%s483_s3 + $0x10] sm:$0xff] %v126_v31  ;;  %159 = vst [vmem:[%s483_s3 + $0x18] sm:$0xff] %v127_v32  ;;  %v64_v45 = vmul.f32 %v220_v1, %v25_v29  ;;  %v100_v46 = vadd.f32 %v225_v2, %v61_v40  ;;  %v65_v47 = vmul.f32 %v220_v1, %v26_v34  ;;  %v38_v24 = vld [vmem:[%s482_s2 + $0xc0] sm:$0xff]  ;;  %v39_v29 = vld [vmem:[%s482_s2 + $0xc8] sm:$0xff] }
   0xb   :  { %160 = vst [vmem:[%s483_s3 + $0x20] sm:$0xff] %v128_v37  ;;  %161 = vst [vmem:[%s483_s3 + $0x28] sm:$0xff] %v129_v38  ;;  %v66_v48 = vmul.f32 %v220_v1, %v27_v35  ;;  %v67_v49 = vmul.f32 %v220_v1, %v28_v36  ;;  %v101_v50 = vadd.f32 %v225_v2, %v62_v43  ;;  %v40_v30 = vld [vmem:[%s482_s2 + $0xd0] sm:$0xff]  ;;  %v41_v31 = vld [vmem:[%s482_s2 + $0xd8] sm:$0xff] }
   0xc   :  { %162 = vst [vmem:[%s483_s3 + $0x30] sm:$0xff] %v130_v39  ;;  %163 = vst [vmem:[%s483_s3 + $0x38] sm:$0xff] %v131_v42  ;;  %v102_v51 = vadd.f32 %v225_v2, %v63_v44  ;;  %v103_v52 = vadd.f32 %v225_v2, %v64_v45  ;;  %v68_v53 = vmul.f32 %v220_v1, %v29_v41  ;;  %v132_v55 = vmax.f32 %v100_v46, 0.0  ;;  %v42_v36 = vld [vmem:[%s482_s2 + $0xe0] sm:$0xff]  ;;  %v43_v37 = vld [vmem:[%s482_s2 + $0xe8] sm:$0xff] }
   0xd   :  { %v104_v56 = vadd.f32 %v225_v2, %v65_v47  ;;  %v105_v57 = vadd.f32 %v225_v2, %v66_v48  ;;  %v106_v58 = vadd.f32 %v225_v2, %v67_v49  ;;  %v133_v62 = vmax.f32 %v101_v50, 0.0  ;;  %v44_v38 = vld [vmem:[%s482_s2 + $0xf0] sm:$0xff]  ;;  %v45_v43 = vld [vmem:[%s482_s2 + $0xf8] sm:$0xff] }
   0xe   :  { %v134_v63 = vmax.f32 %v102_v51, 0.0  ;;  %v135_v0 = vmax.f32 %v103_v52, 0.0  ;;  %v107_v3 = vadd.f32 %v225_v2, %v68_v53  ;;  %164 = vst [vmem:[%s483_s3 + $0x40] sm:$0xff] %v132_v55  ;;  %v69_v10 = vmul.f32 %v220_v1, %v30_v54 }
   0xf   :  { %v136_v7 = vmax.f32 %v104_v56, 0.0  ;;  %v137_v8 = vmax.f32 %v105_v57, 0.0  ;;  %v138_v9 = vmax.f32 %v106_v58, 0.0  ;;  %165 = vst [vmem:[%s483_s3 + $0x48] sm:$0xff] %v133_v62  ;;  %v70_v13 = vmul.f32 %v220_v1, %v31_v59 }
  0x10   :  { %166 = vst [vmem:[%s483_s3 + $0x50] sm:$0xff] %v134_v63  ;;  %167 = vst [vmem:[%s483_s3 + $0x58] sm:$0xff] %v135_v0  ;;  %v139_v12 = vmax.f32 %v107_v3, 0.0  ;;  %v71_v14 = vmul.f32 %v220_v1, %v32_v60  ;;  %v72_v15 = vmul.f32 %v220_v1, %v33_v61  ;;  %v108_v16 = vadd.f32 %v225_v2, %v69_v10 }
  0x11   :  { %168 = vst [vmem:[%s483_s3 + $0x60] sm:$0xff] %v136_v7  ;;  %169 = vst [vmem:[%s483_s3 + $0x68] sm:$0xff] %v137_v8  ;;  %v73_v17 = vmul.f32 %v220_v1, %v34_v4  ;;  %v74_v18 = vmul.f32 %v220_v1, %v35_v5  ;;  %v75_v19 = vmul.f32 %v220_v1, %v36_v6 }
  0x12   :  { %170 = vst [vmem:[%s483_s3 + $0x70] sm:$0xff] %v138_v9  ;;  %171 = vst [vmem:[%s483_s3 + $0x78] sm:$0xff] %v139_v12  ;;  %v109_v20 = vadd.f32 %v225_v2, %v70_v13  ;;  %v110_v21 = vadd.f32 %v225_v2, %v71_v14  ;;  %v111_v22 = vadd.f32 %v225_v2, %v72_v15  ;;  %v140_v25 = vmax.f32 %v108_v16, 0.0 }
  0x13   :  { %v76_v23 = vmul.f32 %v220_v1, %v37_v11  ;;  %v112_v26 = vadd.f32 %v225_v2, %v73_v17  ;;  %v113_v27 = vadd.f32 %v225_v2, %v74_v18  ;;  %v114_v28 = vadd.f32 %v225_v2, %v75_v19 }
  0x14   :  { %v141_v32 = vmax.f32 %v109_v20, 0.0  ;;  %v142_v33 = vmax.f32 %v110_v21, 0.0  ;;  %v143_v34 = vmax.f32 %v111_v22, 0.0  ;;  %172 = vst [vmem:[%s483_s3 + $0x80] sm:$0xff] %v140_v25  ;;  %v77_v42 = vmul.f32 %v220_v1, %v38_v24 }
  0x15   :  { %v115_v35 = vadd.f32 %v225_v2, %v76_v23  ;;  %v144_v39 = vmax.f32 %v112_v26, 0.0  ;;  %v145_v40 = vmax.f32 %v113_v27, 0.0  ;;  %v146_v41 = vmax.f32 %v114_v28, 0.0 }
  0x16   :  { %173 = vst [vmem:[%s483_s3 + $0x88] sm:$0xff] %v141_v32  ;;  %174 = vst [vmem:[%s483_s3 + $0x90] sm:$0xff] %v142_v33  ;;  %v78_v45 = vmul.f32 %v220_v1, %v39_v29  ;;  %v79_v46 = vmul.f32 %v220_v1, %v40_v30  ;;  %v80_v47 = vmul.f32 %v220_v1, %v41_v31 }
  0x17   :  { %175 = vst [vmem:[%s483_s3 + $0x98] sm:$0xff] %v143_v34  ;;  %v147_v44 = vmax.f32 %v115_v35, 0.0  ;;  %176 = vst [vmem:[%s483_s3 + $0xa0] sm:$0xff] %v144_v39  ;;  %v116_v48 = vadd.f32 %v225_v2, %v77_v42  ;;  %v81_v49 = vmul.f32 %v220_v1, %v42_v36  ;;  %v82_v50 = vmul.f32 %v220_v1, %v43_v37 }
  0x18   :  { %177 = vst [vmem:[%s483_s3 + $0xa8] sm:$0xff] %v145_v40  ;;  %178 = vst [vmem:[%s483_s3 + $0xb0] sm:$0xff] %v146_v41  ;;  %v83_v51 = vmul.f32 %v220_v1, %v44_v38  ;;  %v117_v52 = vadd.f32 %v225_v2, %v78_v45  ;;  %v118_v53 = vadd.f32 %v225_v2, %v79_v46 }
  0x19   :  { %179 = vst [vmem:[%s483_s3 + $0xb8] sm:$0xff] %v147_v44  ;;  %v119_v54 = vadd.f32 %v225_v2, %v80_v47  ;;  %v84_v55 = vmul.f32 %v220_v1, %v45_v43  ;;  %v148_v56 = vmax.f32 %v116_v48, 0.0  ;;  %v120_v57 = vadd.f32 %v225_v2, %v81_v49 }
  0x1a   :  { %v121_v58 = vadd.f32 %v225_v2, %v82_v50  ;;  %v122_v59 = vadd.f32 %v225_v2, %v83_v51  ;;  %v149_v60 = vmax.f32 %v117_v52, 0.0  ;;  %v150_v61 = vmax.f32 %v118_v53, 0.0 }
  0x1b   :  { %v151_v62 = vmax.f32 %v119_v54, 0.0  ;;  %v123_v63 = vadd.f32 %v225_v2, %v84_v55  ;;  %180 = vst [vmem:[%s483_s3 + $0xc0] sm:$0xff] %v148_v56  ;;  %v152_v0 = vmax.f32 %v120_v57, 0.0 }
  0x1c   :  { %v153_v3 = vmax.f32 %v121_v58, 0.0  ;;  %v154_v4 = vmax.f32 %v122_v59, 0.0  ;;  %181 = vst [vmem:[%s483_s3 + $0xc8] sm:$0xff] %v149_v60  ;;  %182 = vst [vmem:[%s483_s3 + $0xd0] sm:$0xff] %v150_v61 }
  0x1d   :  { %183 = vst [vmem:[%s483_s3 + $0xd8] sm:$0xff] %v151_v62  ;;  %v155_v1 = vmax.f32 %v123_v63, 0.0  ;;  %184 = vst [vmem:[%s483_s3 + $0xe0] sm:$0xff] %v152_v0 }
  0x1e   :  { %185 = vst [vmem:[%s483_s3 + $0xe8] sm:$0xff] %v153_v3  ;;  %186 = vst [vmem:[%s483_s3 + $0xf0] sm:$0xff] %v154_v4 }
  0x1f   :  { %187 = vst [vmem:[%s483_s3 + $0xf8] sm:$0xff] %v155_v1 }

// kernel: residual_block.7
= control target key start
LH: loop header
LB: loop body
LE: loop exit
PB: predicated region body
PF: predicated region fallthrough
CT: control target
= control target key end

     0   :  { %s648_s0 = inlined_call_operand.vmem [shape: f32[1,128], index: 0, kind: input, shape index: {}]   ;;  %s649_s1 = inlined_call_operand.vmem [shape: f32[1,128], index: 1, kind: input, shape index: {}]   ;;  %s650_s2 = inlined_call_operand.vmem [shape: f32[256,128], index: 2, kind: input, shape index: {}]   ;;  %s651_s3 = inlined_call_operand.vmem [shape: f32[256,128], index: 3, kind: input, shape index: {}]   ;;  %s652_s4 = inlined_call_operand.vmem [shape: f32[256,128], index: 4, kind: output, shape index: {}]  }
   0x1   :  { %v17_v0 = vld [vmem:[%s650_s2] sm:$0xff]  ;;  %v18_v4 = vld [vmem:[%s650_s2 + $0x8] sm:$0xff]  ;;  %v19_v7 = vld [vmem:[%s650_s2 + $0x10] sm:$0xff] }
   0x2   :  { %v292_v1 = vld [vmem:[%s648_s0] ss:$0 sm:$0xff]  ;;  %v20_v8 = vld [vmem:[%s650_s2 + $0x18] sm:$0xff]  ;;  %v128_v10 = vld [vmem:[%s651_s3 + $0x8] sm:$0xff] }
   0x3   :  { %v297_v2 = vld [vmem:[%s649_s1] ss:$0 sm:$0xff]  ;;  %v56_v3 = vmul.f32 %v292_v1, %v17_v0  ;;  %v57_v6 = vmul.f32 %v292_v1, %v18_v4  ;;  %v58_v11 = vmul.f32 %v292_v1, %v19_v7  ;;  %v129_v12 = vld [vmem:[%s651_s3 + $0x10] sm:$0xff]  ;;  %v59_v13 = vmul.f32 %v292_v1, %v20_v8  ;;  %v130_v16 = vld [vmem:[%s651_s3 + $0x18] sm:$0xff] }
   0x4   :  { %v127_v5 = vld [vmem:[%s651_s3] sm:$0xff]  ;;  %v22_v18 = vld [vmem:[%s650_s2 + $0x28] sm:$0xff]  ;;  %v23_v19 = vld [vmem:[%s650_s2 + $0x30] sm:$0xff] }
   0x5   :  { %v95_v9 = vadd.f32 %v297_v2, %v56_v3  ;;  %v21_v14 = vld [vmem:[%s650_s2 + $0x20] sm:$0xff]  ;;  %v96_v15 = vadd.f32 %v297_v2, %v57_v6  ;;  %v97_v21 = vadd.f32 %v297_v2, %v58_v11  ;;  %v98_v22 = vadd.f32 %v297_v2, %v59_v13  ;;  %v24_v25 = vld [vmem:[%s650_s2 + $0x38] sm:$0xff]  ;;  %v132_v28 = vld [vmem:[%s651_s3 + $0x28] sm:$0xff] }
   0x6   :  { %v60_v17 = vmul.f32 %v292_v1, %v21_v14  ;;  %v131_v23 = vld [vmem:[%s651_s3 + $0x20] sm:$0xff]  ;;  %v61_v24 = vmul.f32 %v292_v1, %v22_v18  ;;  %v62_v29 = vmul.f32 %v292_v1, %v23_v19  ;;  %v63_v30 = vmul.f32 %v292_v1, %v24_v25  ;;  %v133_v36 = vld [vmem:[%s651_s3 + $0x30] sm:$0xff]  ;;  %v134_v37 = vld [vmem:[%s651_s3 + $0x38] sm:$0xff] }
   0x7   :  { %v159_v20 = vadd.f32 %v127_v5, %v95_v9  ;;  %v160_v26 = vadd.f32 %v128_v10, %v96_v15  ;;  %v25_v31 = vld [vmem:[%s650_s2 + $0x40] sm:$0xff]  ;;  %v161_v33 = vadd.f32 %v129_v12, %v97_v21  ;;  %v162_v34 = vadd.f32 %v130_v16, %v98_v22  ;;  %v26_v38 = vld [vmem:[%s650_s2 + $0x48] sm:$0xff]  ;;  %v27_v43 = vld [vmem:[%s650_s2 + $0x50] sm:$0xff] }
   0x8   :  { %v99_v27 = vadd.f32 %v297_v2, %v60_v17  ;;  %v100_v35 = vadd.f32 %v297_v2, %v61_v24  ;;  %v101_v41 = vadd.f32 %v297_v2, %v62_v29  ;;  %v102_v42 = vadd.f32 %v297_v2, %v63_v30  ;;  %v28_v44 = vld [vmem:[%s650_s2 + $0x58] sm:$0xff]  ;;  %v29_v49 = vld [vmem:[%s650_s2 + $0x60] sm:$0xff]  ;;  %v30_v55 = vld [vmem:[%s650_s2 + $0x68] sm:$0xff] }
   0x9   :  { %v191_v32 = vmax.f32 %v159_v20, 0.0  ;;  %v192_v39 = vmax.f32 %v160_v26, 0.0  ;;  %v193_v45 = vmax.f32 %v161_v33, 0.0  ;;  %v194_v46 = vmax.f32 %v162_v34, 0.0  ;;  %v135_v53 = vld [vmem:[%s651_s3 + $0x40] sm:$0xff]  ;;  %v136_v58 = vld [vmem:[%s651_s3 + $0x48] sm:$0xff] }
   0xa   :  { %v163_v40 = vadd.f32 %v131_v23, %v99_v27  ;;  %v164_v47 = vadd.f32 %v132_v28, %v100_v35  ;;  %v64_v48 = vmul.f32 %v292_v1, %v25_v31  ;;  %v165_v51 = vadd.f32 %v133_v36, %v101_v41  ;;  %v31_v61 = vld [vmem:[%s650_s2 + $0x70] sm:$0xff]  ;;  %v32_v62 = vld [vmem:[%s650_s2 + $0x78] sm:$0xff]  ;;  %v139_v10 = vld [vmem:[%s651_s3 + $0x60] sm:$0xff] }
   0xb   :  { %223 = vst [vmem:[%s652_s4] sm:$0xff] %v191_v32  ;;  %224 = vst [vmem:[%s652_s4 + $0x8] sm:$0xff] %v192_v39  ;;  %v166_v52 = vadd.f32 %v134_v37, %v102_v42  ;;  %v65_v54 = vmul.f32 %v292_v1, %v26_v38  ;;  %v66_v59 = vmul.f32 %v292_v1, %v27_v43  ;;  %v137_v4 = vld [vmem:[%s651_s3 + $0x50] sm:$0xff]  ;;  %v138_v5 = vld [vmem:[%s651_s3 + $0x58] sm:$0xff] }
   0xc   :  { %v195_v50 = vmax.f32 %v163_v40, 0.0  ;;  %225 = vst [vmem:[%s652_s4 + $0x10] sm:$0xff] %v193_v45  ;;  %226 = vst [vmem:[%s652_s4 + $0x18] sm:$0xff] %v194_v46  ;;  %v196_v56 = vmax.f32 %v164_v47, 0.0  ;;  %v103_v57 = vadd.f32 %v297_v2, %v64_v48  ;;  %v67_v60 = vmul.f32 %v292_v1, %v28_v44  ;;  %v140_v14 = vld [vmem:[%s651_s3 + $0x68] sm:$0xff]  ;;  %v33_v17 = vld [vmem:[%s650_s2 + $0x80] sm:$0xff] }
   0xd   :  { %v197_v63 = vmax.f32 %v165_v51, 0.0  ;;  %v198_v0 = vmax.f32 %v166_v52, 0.0  ;;  %v104_v3 = vadd.f32 %v297_v2, %v65_v54  ;;  %v68_v6 = vmul.f32 %v292_v1, %v29_v49  ;;  %v141_v22 = vld [vmem:[%s651_s3 + $0x70] sm:$0xff]  ;;  %v142_v23 = vld [vmem:[%s651_s3 + $0x78] sm:$0xff]  ;;  %v34_v24 = vld [vmem:[%s650_s2 + $0x88] sm:$0xff] }
   0xe   :  { %227 = vst [vmem:[%s652_s4 + $0x20] sm:$0xff] %v195_v50  ;;  %228 = vst [vmem:[%s652_s4 + $0x28] sm:$0xff] %v196_v56  ;;  %v167_v7 = vadd.f32 %v135_v53, %v103_v57  ;;  %v105_v8 = vadd.f32 %v297_v2, %v66_v59  ;;  %v106_v9 = vadd.f32 %v297_v2, %v67_v60  ;;  %v35_v29 = vld [vmem:[%s650_s2 + $0x90] sm:$0xff]  ;;  %v36_v30 = vld [vmem:[%s650_s2 + $0x98] sm:$0xff] }
   0xf   :  { %v69_v11 = vmul.f32 %v292_v1, %v30_v55  ;;  %229 = vst [vmem:[%s652_s4 + $0x30] sm:$0xff] %v197_v63  ;;  %230 = vst [vmem:[%s652_s4 + $0x38] sm:$0xff] %v198_v0  ;;  %v168_v12 = vadd.f32 %v136_v58, %v104_v3  ;;  %v107_v13 = vadd.f32 %v297_v2, %v68_v6  ;;  %v37_v35 = vld [vmem:[%s650_s2 + $0xa0] sm:$0xff]  ;;  %v38_v41 = vld [vmem:[%s650_s2 + $0xa8] sm:$0xff] }
  0x10   :  { %v70_v15 = vmul.f32 %v292_v1, %v31_v61  ;;  %v71_v16 = vmul.f32 %v292_v1, %v32_v62  ;;  %v199_v18 = vmax.f32 %v167_v7, 0.0  ;;  %v169_v19 = vadd.f32 %v137_v4, %v105_v8  ;;  %v143_v39 = vld [vmem:[%s651_s3 + $0x80] sm:$0xff]  ;;  %v144_v44 = vld [vmem:[%s651_s3 + $0x88] sm:$0xff]  ;;  %v39_v47 = vld [vmem:[%s650_s2 + $0xb0] sm:$0xff] }
  0x11   :  { %v170_v20 = vadd.f32 %v138_v5, %v106_v9  ;;  %v108_v21 = vadd.f32 %v297_v2, %v69_v11  ;;  %v200_v25 = vmax.f32 %v168_v12, 0.0  ;;  %v171_v26 = vadd.f32 %v139_v10, %v107_v13  ;;  %v40_v48 = vld [vmem:[%s650_s2 + $0xb8] sm:$0xff]  ;;  %v145_v52 = vld [vmem:[%s651_s3 + $0x90] sm:$0xff]  ;;  %v147_v58 = vld [vmem:[%s651_s3 + $0xa0] sm:$0xff] }
  0x12   :  { %v109_v27 = vadd.f32 %v297_v2, %v70_v15  ;;  %v110_v28 = vadd.f32 %v297_v2, %v71_v16  ;;  %231 = vst [vmem:[%s652_s4 + $0x40] sm:$0xff] %v199_v18  ;;  %v201_v31 = vmax.f32 %v169_v19, 0.0  ;;  %v72_v34 = vmul.f32 %v292_v1, %v33_v17  ;;  %v146_v53 = vld [vmem:[%s651_s3 + $0x98] sm:$0xff]  ;;  %v148_v62 = vld [vmem:[%s651_s3 + $0xa8] sm:$0xff]  ;;  %v41_v3 = vld [vmem:[%s650_s2 + $0xc0] sm:$0xff] }
  0x13   :  { %v202_v32 = vmax.f32 %v170_v20, 0.0  ;;  %v172_v33 = vadd.f32 %v140_v14, %v108_v21  ;;  %232 = vst [vmem:[%s652_s4 + $0x48] sm:$0xff] %v200_v25  ;;  %v203_v36 = vmax.f32 %v171_v26, 0.0  ;;  %v73_v40 = vmul.f32 %v292_v1, %v34_v24  ;;  %v149_v8 = vld [vmem:[%s651_s3 + $0xb0] sm:$0xff]  ;;  %v150_v9 = vld [vmem:[%s651_s3 + $0xb8] sm:$0xff]  ;;  %v42_v10 = vld [vmem:[%s650_s2 + $0xc8] sm:$0xff] }
  0x14   :  { %v173_v37 = vadd.f32 %v141_v22, %v109_v27  ;;  %v174_v38 = vadd.f32 %v142_v23, %v110_v28  ;;  %233 = vst [vmem:[%s652_s4 + $0x50] sm:$0xff] %v201_v31  ;;  %v111_v43 = vadd.f32 %v297_v2, %v72_v34  ;;  %v74_v45 = vmul.f32 %v292_v1, %v35_v29  ;;  %v43_v15 = vld [vmem:[%s650_s2 + $0xd0] sm:$0xff]  ;;  %v44_v16 = vld [vmem:[%s650_s2 + $0xd8] sm:$0xff]  ;;  %v45_v21 = vld [vmem:[%s650_s2 + $0xe0] sm:$0xff] }
  0x15   :  { %234 = vst [vmem:[%s652_s4 + $0x58] sm:$0xff] %v202_v32  ;;  %v204_v42 = vmax.f32 %v172_v33, 0.0  ;;  %v75_v46 = vmul.f32 %v292_v1, %v36_v30  ;;  %235 = vst [vmem:[%s652_s4 + $0x60] sm:$0xff] %v203_v36  ;;  %v112_v51 = vadd.f32 %v297_v2, %v73_v40  ;;  %v76_v54 = vmul.f32 %v292_v1, %v37_v35  ;;  %v151_v25 = vld [vmem:[%s651_s3 + $0xc0] sm:$0xff]  ;;  %v46_v27 = vld [vmem:[%s650_s2 + $0xe8] sm:$0xff] }
  0x16   :  { %v205_v49 = vmax.f32 %v173_v37, 0.0  ;;  %v206_v50 = vmax.f32 %v174_v38, 0.0  ;;  %v175_v55 = vadd.f32 %v143_v39, %v111_v43  ;;  %v113_v56 = vadd.f32 %v297_v2, %v74_v45  ;;  %v152_v30 = vld [vmem:[%s651_s3 + $0xc8] sm:$0xff]  ;;  %v47_v33 = vld [vmem:[%s650_s2 + $0xf0] sm:$0xff]  ;;  %v48_v34 = vld [vmem:[%s650_s2 + $0xf8] sm:$0xff] }
  0x17   :  { %236 = vst [vmem:[%s652_s4 + $0x68] sm:$0xff] %v204_v42  ;;  %v114_v57 = vadd.f32 %v297_v2, %v75_v46  ;;  %v77_v59 = vmul.f32 %v292_v1, %v38_v41  ;;  %v176_v60 = vadd.f32 %v144_v44, %v112_v51  ;;  %v115_v61 = vadd.f32 %v297_v2, %v76_v54  ;;  %v153_v38 = vld [vmem:[%s651_s3 + $0xd0] sm:$0xff]  ;;  %v154_v39 = vld [vmem:[%s651_s3 + $0xd8] sm:$0xff]  ;;  %v155_v44 = vld [vmem:[%s651_s3 + $0xe0] sm:$0xff] }
  0x18   :  { %237 = vst [vmem:[%s652_s4 + $0x70] sm:$0xff] %v205_v49  ;;  %238 = vst [vmem:[%s652_s4 + $0x78] sm:$0xff] %v206_v50  ;;  %v78_v63 = vmul.f32 %v292_v1, %v39_v47  ;;  %v79_v0 = vmul.f32 %v292_v1, %v40_v48  ;;  %v207_v4 = vmax.f32 %v175_v55, 0.0  ;;  %v177_v5 = vadd.f32 %v145_v52, %v113_v56  ;;  %v156_v48 = vld [vmem:[%s651_s3 + $0xe8] sm:$0xff]  ;;  %v157_v55 = vld [vmem:[%s651_s3 + $0xf0] sm:$0xff] }
  0x19   :  { %v178_v6 = vadd.f32 %v146_v53, %v114_v57  ;;  %v116_v7 = vadd.f32 %v297_v2, %v77_v59  ;;  %v208_v11 = vmax.f32 %v176_v60, 0.0  ;;  %v179_v12 = vadd.f32 %v147_v58, %v115_v61  ;;  %v158_v56 = vld [vmem:[%s651_s3 + $0xf8] sm:$0xff] }
  0x1a   :  { %v117_v13 = vadd.f32 %v297_v2, %v78_v63  ;;  %v118_v14 = vadd.f32 %v297_v2, %v79_v0  ;;  %239 = vst [vmem:[%s652_s4 + $0x80] sm:$0xff] %v207_v4  ;;  %v209_v17 = vmax.f32 %v177_v5, 0.0  ;;  %v80_v20 = vmul.f32 %v292_v1, %v41_v3 }
  0x1b   :  { %v210_v18 = vmax.f32 %v178_v6, 0.0  ;;  %v180_v19 = vadd.f32 %v148_v62, %v116_v7  ;;  %240 = vst [vmem:[%s652_s4 + $0x88] sm:$0xff] %v208_v11  ;;  %v211_v22 = vmax.f32 %v179_v12, 0.0  ;;  %v81_v26 = vmul.f32 %v292_v1, %v42_v10 }
  0x1c   :  { %v181_v23 = vadd.f32 %v149_v8, %v117_v13  ;;  %v182_v24 = vadd.f32 %v150_v9, %v118_v14  ;;  %241 = vst [vmem:[%s652_s4 + $0x90] sm:$0xff] %v209_v17  ;;  %v119_v29 = vadd.f32 %v297_v2, %v80_v20  ;;  %v82_v31 = vmul.f32 %v292_v1, %v43_v15 }
  0x1d   :  { %242 = vst [vmem:[%s652_s4 + $0x98] sm:$0xff] %v210_v18  ;;  %v212_v28 = vmax.f32 %v180_v19, 0.0  ;;  %v83_v32 = vmul.f32 %v292_v1, %v44_v16  ;;  %243 = vst [vmem:[%s652_s4 + $0xa0] sm:$0xff] %v211_v22  ;;  %v120_v37 = vadd.f32 %v297_v2, %v81_v26  ;;  %v84_v40 = vmul.f32 %v292_v1, %v45_v21 }
  0x1e   :  { %v213_v35 = vmax.f32 %v181_v23, 0.0  ;;  %v214_v36 = vmax.f32 %v182_v24, 0.0  ;;  %v183_v41 = vadd.f32 %v151_v25, %v119_v29  ;;  %v121_v42 = vadd.f32 %v297_v2, %v82_v31 }
  0x1f   :  { %244 = vst [vmem:[%s652_s4 + $0xa8] sm:$0xff] %v212_v28  ;;  %v122_v43 = vadd.f32 %v297_v2, %v83_v32  ;;  %v85_v45 = vmul.f32 %v292_v1, %v46_v27  ;;  %v184_v46 = vadd.f32 %v152_v30, %v120_v37  ;;  %v123_v47 = vadd.f32 %v297_v2, %v84_v40 }
  0x20   :  { %245 = vst [vmem:[%s652_s4 + $0xb0] sm:$0xff] %v213_v35  ;;  %246 = vst [vmem:[%s652_s4 + $0xb8] sm:$0xff] %v214_v36  ;;  %v86_v49 = vmul.f32 %v292_v1, %v47_v33  ;;  %v87_v50 = vmul.f32 %v292_v1, %v48_v34  ;;  %v215_v51 = vmax.f32 %v183_v41, 0.0  ;;  %v185_v52 = vadd.f32 %v153_v38, %v121_v42 }
  0x21   :  { %v186_v53 = vadd.f32 %v154_v39, %v122_v43  ;;  %v124_v54 = vadd.f32 %v297_v2, %v85_v45  ;;  %v216_v57 = vmax.f32 %v184_v46, 0.0  ;;  %v187_v58 = vadd.f32 %v155_v44, %v123_v47 }
  0x22   :  { %v125_v59 = vadd.f32 %v297_v2, %v86_v49  ;;  %v126_v60 = vadd.f32 %v297_v2, %v87_v50  ;;  %247 = vst [vmem:[%s652_s4 + $0xc0] sm:$0xff] %v215_v51  ;;  %v217_v1 = vmax.f32 %v185_v52, 0.0 }
  0x23   :  { %v218_v61 = vmax.f32 %v186_v53, 0.0  ;;  %v188_v62 = vadd.f32 %v156_v48, %v124_v54  ;;  %248 = vst [vmem:[%s652_s4 + $0xc8] sm:$0xff] %v216_v57  ;;  %v219_v63 = vmax.f32 %v187_v58, 0.0 }
  0x24   :  { %v189_v0 = vadd.f32 %v157_v55, %v125_v59  ;;  %v190_v3 = vadd.f32 %v158_v56, %v126_v60  ;;  %249 = vst [vmem:[%s652_s4 + $0xd0] sm:$0xff] %v217_v1 }
  0x25   :  { %250 = vst [vmem:[%s652_s4 + $0xd8] sm:$0xff] %v218_v61  ;;  %v220_v2 = vmax.f32 %v188_v62, 0.0  ;;  %251 = vst [vmem:[%s652_s4 + $0xe0] sm:$0xff] %v219_v63 }
  0x26   :  { %v221_v4 = vmax.f32 %v189_v0, 0.0  ;;  %v222_v5 = vmax.f32 %v190_v3, 0.0 }
  0x27   :  { %252 = vst [vmem:[%s652_s4 + $0xe8] sm:$0xff] %v220_v2 }
  0x28   :  { %253 = vst [vmem:[%s652_s4 + $0xf0] sm:$0xff] %v221_v4  ;;  %254 = vst [vmem:[%s652_s4 + $0xf8] sm:$0xff] %v222_v5 }

</bundles_post_ra>
